<compile_context>
chip_gen: v6e
topology: v6e:2x2x1
jax: 0.10.0
libtpu: 0.0.40
codegen_flags: <defaults>
</compile_context>

<pallas_src>
import math

import jax
import jax.numpy as jnp
from jax.experimental import pallas as pl
from jax.experimental.pallas import tpu as pltpu


def _rnn_fused_kernel(x_ref, w_ih_ref, w_hh_ref, b_ref, w_lin_ref, b_lin_ref,
                      y_ref):
    """Whole RNN forward in one invocation (no grid).

    x_ref:     (B, T)        input scalar sequence, lane-dense (T along lanes)
    w_ih_ref:  (L, 1, 4H)    input->gate weights, gate order (i, f, g, o)
    w_hh_ref:  (L, H, 4H)    hidden->gate weights (gates fused on lane axis)
    b_ref:     (L, 1, 4H)    combined gate bias (b_ih + b_hh)
    w_lin_ref: (L, 1, H)     output Linear(H, 1) weight (as a row)
    b_lin_ref: (L,)          output Linear bias, in SMEM
    y_ref:     (B, T)        output scalar sequence, lane-dense
    """
    B, T = x_ref.shape
    L, H, _ = w_hh_ref.shape
    last = L - 1

    # Per-layer weights / hoisted bias broadcasts (once per layer, not per step).
    w_ih = [w_ih_ref[l] for l in range(L)]                     # (1, 4H)
    w_hh = [w_hh_ref[l] for l in range(L)]                     # (H, 4H)
    w_lin = [w_lin_ref[l] for l in range(L)]                   # (1, H)
    b_lin = [b_lin_ref[l] for l in range(L)]                   # SMEM scalars
    bias = [jnp.broadcast_to(b_ref[l], (B, 4 * H)) for l in range(L)]

    # Recurrent state per layer (zero init: self.hidden is None in the module).
    h = [jnp.zeros((B, H), jnp.float32) for _ in range(L)]
    c = [jnp.zeros((B, H), jnp.float32) for _ in range(L)]

    # Layer-0 input path hoisted off the serial chain: pre0[t] = x_t*w_ih + b.
    x_in = [x_ref[:, t:t + 1] for t in range(T)]               # (B, 1) lane slices
    layer_in = [x_in] + [[None] * T for _ in range(L - 1)]     # per-layer inputs
    pre = ([[x_in[t] * w_ih[0] + bias[0] for t in range(T)]]
           + [[None] * T for _ in range(L - 1)])               # (B, 4H) each

    h_last = [None] * T                                        # last layer's h_t

    # Wavefront schedule over the (layer, time) grid: layer l+1 step t is
    # emitted right after layer l step t, so with L layers the kernel exposes
    # L overlapping dot->EUP recurrence chains inside one basic block.
    for s in range(T + L - 1):
        for l in range(L):
            t = s - l
            if t < 0 or t >= T:
                continue
            # One fused gate matmul per step: (B,H) x (H,4H); the input
            # contribution + bias is already folded into pre[l][t].
            gates = pre[l][t] + jnp.dot(h[l], w_hh[l],
                                        preferred_element_type=jnp.float32)
            # 3 EUP round-trips per step instead of 5: one sigmoid over the
            # whole gates slab (extra work on the g lanes is free filler),
            # one tanh on the g slice, one tanh(c).
            sg = jax.nn.sigmoid(gates)                         # (B, 4H)
            i_g = sg[:, 0:H]
            f_g = sg[:, H:2 * H]
            o_g = sg[:, 3 * H:4 * H]
            g_g = jnp.tanh(gates[:, 2 * H:3 * H])
            c[l] = f_g * c[l] + i_g * g_g
            h[l] = o_g * jnp.tanh(c[l])
            if l == last:
                h_last[t] = h[l]                               # Linear deferred
            else:
                # Linear(H,1) + residual feed the NEXT layer at the same t,
                # so they stay on the handoff chain for intermediate layers.
                y_t = (jnp.sum(h[l] * w_lin[l], axis=-1, keepdims=True)
                       + b_lin[l] + layer_in[l][t])            # (B, 1)
                layer_in[l + 1][t] = y_t
                pre[l + 1][t] = y_t * w_ih[l + 1] + bias[l + 1]

    # Deferred last-layer Linear(H,1) + residual: y never feeds h/c, so these
    # reduces sit fully off the serial chain; single aligned (B, T) store.
    outs = [(jnp.sum(h_last[t] * w_lin[last], axis=-1, keepdims=True)
             + b_lin[last] + layer_in[last][t]) for t in range(T)]
    y_ref[...] = jnp.concatenate(outs, axis=-1)


def rnn_forward(x, params):
    """x: (T, B, 1) float32 -> (T, B, 1) float32."""
    T, B, I = x.shape
    # TODO(synk): general input_size > 1 (only meaningful for num_layers == 1
    # in the original module) is not implemented; the layer chaining in the
    # PyTorch RNN requires input_size == 1.
    assert I == 1, "fused kernel specializes to input_size == 1"

    # Lane-dense (B, T) slab; pad batch to a full sublane group of 8 so no
    # vector op in the kernel runs masked. Padded rows are garbage -> sliced off.
    Bp = max(8, ((B + 7) // 8) * 8)
    x2d = x[:, :, 0].T                                   # (B, T)
    if Bp != B:
        x2d = jnp.pad(x2d, ((0, Bp - B), (0, 0)))

    y2d = pl.pallas_call(
        _rnn_fused_kernel,
        out_shape=jax.ShapeDtypeStruct((Bp, T), jnp.float32),
        in_specs=[
            pl.BlockSpec(memory_space=pltpu.MemorySpace.VMEM),   # x (Bp, T)
            pl.BlockSpec(memory_space=pltpu.MemorySpace.VMEM),   # w_ih (L, 1, 4H)
            pl.BlockSpec(memory_space=pltpu.MemorySpace.VMEM),   # w_hh (L, H, 4H)
            pl.BlockSpec(memory_space=pltpu.MemorySpace.VMEM),   # b    (L, 1, 4H)
            pl.BlockSpec(memory_space=pltpu.MemorySpace.VMEM),   # w_lin (L, 1, H)
            pl.BlockSpec(memory_space=pltpu.MemorySpace.SMEM),   # b_lin (L,) scalars
        ],
        out_specs=pl.BlockSpec(memory_space=pltpu.MemorySpace.VMEM),
        compiler_params=pltpu.CompilerParams(
            # All weights + activations stay resident in VMEM; raise the
            # scoped limit explicitly so larger H / L keep compiling (v5e's
            # default is only 16 MiB).
            # TODO(synk): at v7x scale, add a "parallel" batch grid axis to
            # use both TensorCores and stream w_hh per layer for 64 MiB VMEM.
            vmem_limit_bytes=32 * 1024 * 1024),
    )(x2d, params["w_ih"], params["w_hh"], params["b"],
      params["w_lin"], params["b_lin"])

    return y2d[:B].T[:, :, None]                         # back to (T, B, 1)


def init_params(key, num_layers, hidden_size):
    """Deterministic synthetic parameters (PyTorch-style uniform init),
    already packed in the fused-gate layout (gate order i, f, g, o)."""
    bound = 1.0 / math.sqrt(hidden_size)
    k0, k1, k2, k3, k4, k5 = jax.random.split(key, 6)
    H, L = hidden_size, num_layers
    u = lambda k, shape: jax.random.uniform(k, shape, minval=-bound,
                                            maxval=bound, dtype=jnp.float32)
    w_ih = u(k0, (L, 1, 4 * H))
    w_hh = u(k1, (L, H, 4 * H))
    b_ih = u(k2, (L, 1, 4 * H))
    b_hh = u(k3, (L, 1, 4 * H))
    w_lin = u(k4, (L, 1, H))
    b_lin = u(k5, (L,))
    return dict(w_ih=w_ih, w_hh=w_hh, b=b_ih + b_hh, w_lin=w_lin, b_lin=b_lin)


def _ref_rnn(x, w_ih, w_hh, b, w_lin, b_lin):
    """Plain-JAX reference (same packed layout) for a correctness check."""
    T, B, _ = x.shape
    L, H, _ = w_hh.shape
    seq = x[:, :, 0]                                    # (T, B)
    for l in range(L):
        h = jnp.zeros((B, H), jnp.float32)
        c = jnp.zeros((B, H), jnp.float32)
        outs = []
        for t in range(T):
            x_t = seq[t][:, None]                       # (B, 1)
            gates = x_t @ w_ih[l] + h @ w_hh[l] + b[l]  # (B, 4H)
            i = jax.nn.sigmoid(gates[:, 0:H])
            f = jax.nn.sigmoid(gates[:, H:2 * H])
            g = jnp.tanh(gates[:, 2 * H:3 * H])
            o = jax.nn.sigmoid(gates[:, 3 * H:4 * H])
            c = f * c + i * g
            h = o * jnp.tanh(c)
            y = h @ w_lin[l].T + b_lin[l] + x_t         # (B, 1)
            outs.append(y[:, 0])
        seq = jnp.stack(outs, axis=0)                   # (T, B)
    return seq[:, :, None]


if __name__ == "__main__":
    SEQ, BATCH = 8, 2
    INPUT_SIZE, HIDDEN_SIZE, NUM_LAYERS = 1, 16, 2

    key = jax.random.PRNGKey(0)
    key, xk = jax.random.split(key)
    x = jax.random.normal(xk, (SEQ, BATCH, INPUT_SIZE), dtype=jnp.float32)

    params = init_params(key, NUM_LAYERS, HIDDEN_SIZE)

    y = rnn_forward(x, params)
    y = jax.block_until_ready(y)

    y_ref = _ref_rnn(x, **params)
    assert y.shape == (SEQ, BATCH, 1)
    assert jnp.allclose(y, y_ref, atol=1e-5, rtol=1e-5), "mismatch vs reference"

    print("KERNEL_OK")
</pallas_src>

<mosaic_0001>
module attributes {stable_mosaic.version = 11 : i64} {
  func.func @_rnn_fused_kernel(%arg0: memref<8x8xf32, #tpu.memory_space<vmem>>, %arg1: memref<2x1x64xf32, #tpu.memory_space<vmem>>, %arg2: memref<2x16x64xf32, #tpu.memory_space<vmem>>, %arg3: memref<2x1x64xf32, #tpu.memory_space<vmem>>, %arg4: memref<2x1x16xf32, #tpu.memory_space<vmem>>, %arg5: memref<2xf32, #tpu.memory_space<smem>>, %arg6: memref<8x8xf32, #tpu.memory_space<vmem>>) attributes {dimension_semantics = [], scalar_prefetch = 0 : i64, scratch_operands = 0 : i64, tpu.core_type = #tpu.core_type<tc>} {
    %c0 = arith.constant 0 : index
    %c0_0 = arith.constant 0 : index
    %c0_1 = arith.constant 0 : index
    %0 = vector.load %arg1[%c0, %c0_0, %c0_1] : memref<2x1x64xf32, #tpu.memory_space<vmem>>, vector<1x1x64xf32>
    %1 = vector.shape_cast %0 : vector<1x1x64xf32> to vector<1x64xf32>
    %c1 = arith.constant 1 : index
    %c0_2 = arith.constant 0 : index
    %c0_3 = arith.constant 0 : index
    %2 = vector.load %arg1[%c1, %c0_2, %c0_3] : memref<2x1x64xf32, #tpu.memory_space<vmem>>, vector<1x1x64xf32>
    %3 = vector.shape_cast %2 : vector<1x1x64xf32> to vector<1x64xf32>
    %c0_4 = arith.constant 0 : index
    %c0_5 = arith.constant 0 : index
    %c0_6 = arith.constant 0 : index
    %4 = vector.load %arg2[%c0_4, %c0_5, %c0_6] : memref<2x16x64xf32, #tpu.memory_space<vmem>>, vector<1x16x64xf32>
    %5 = vector.shape_cast %4 : vector<1x16x64xf32> to vector<16x64xf32>
    %c1_7 = arith.constant 1 : index
    %c0_8 = arith.constant 0 : index
    %c0_9 = arith.constant 0 : index
    %6 = vector.load %arg2[%c1_7, %c0_8, %c0_9] : memref<2x16x64xf32, #tpu.memory_space<vmem>>, vector<1x16x64xf32>
    %7 = vector.shape_cast %6 : vector<1x16x64xf32> to vector<16x64xf32>
    %c0_10 = arith.constant 0 : index
    %c0_11 = arith.constant 0 : index
    %c0_12 = arith.constant 0 : index
    %8 = vector.load %arg4[%c0_10, %c0_11, %c0_12] : memref<2x1x16xf32, #tpu.memory_space<vmem>>, vector<1x1x16xf32>
    %9 = vector.shape_cast %8 : vector<1x1x16xf32> to vector<1x16xf32>
    %c1_13 = arith.constant 1 : index
    %c0_14 = arith.constant 0 : index
    %c0_15 = arith.constant 0 : index
    %10 = vector.load %arg4[%c1_13, %c0_14, %c0_15] : memref<2x1x16xf32, #tpu.memory_space<vmem>>, vector<1x1x16xf32>
    %11 = vector.shape_cast %10 : vector<1x1x16xf32> to vector<1x16xf32>
    %c0_16 = arith.constant 0 : index
    %12 = memref.load %arg5[%c0_16] : memref<2xf32, #tpu.memory_space<smem>>
    %c1_17 = arith.constant 1 : index
    %13 = memref.load %arg5[%c1_17] : memref<2xf32, #tpu.memory_space<smem>>
    %c0_18 = arith.constant 0 : index
    %c0_19 = arith.constant 0 : index
    %c0_20 = arith.constant 0 : index
    %14 = vector.load %arg3[%c0_18, %c0_19, %c0_20] : memref<2x1x64xf32, #tpu.memory_space<vmem>>, vector<1x1x64xf32>
    %15 = vector.shape_cast %14 : vector<1x1x64xf32> to vector<1x64xf32>
    %16 = vector.shape_cast %15 : vector<1x64xf32> to vector<1x64xf32>
    %17 = vector.broadcast %16 : vector<1x64xf32> to vector<8x64xf32>
    %c1_21 = arith.constant 1 : index
    %c0_22 = arith.constant 0 : index
    %c0_23 = arith.constant 0 : index
    %18 = vector.load %arg3[%c1_21, %c0_22, %c0_23] : memref<2x1x64xf32, #tpu.memory_space<vmem>>, vector<1x1x64xf32>
    %19 = vector.shape_cast %18 : vector<1x1x64xf32> to vector<1x64xf32>
    %20 = vector.shape_cast %19 : vector<1x64xf32> to vector<1x64xf32>
    %21 = vector.broadcast %20 : vector<1x64xf32> to vector<8x64xf32>
    %cst = arith.constant 0.000000e+00 : f32
    %22 = vector.broadcast %cst : f32 to vector<8x16xf32>
    %cst_24 = arith.constant 0.000000e+00 : f32
    %23 = vector.broadcast %cst_24 : f32 to vector<8x16xf32>
    %cst_25 = arith.constant 0.000000e+00 : f32
    %24 = vector.broadcast %cst_25 : f32 to vector<8x16xf32>
    %cst_26 = arith.constant 0.000000e+00 : f32
    %25 = vector.broadcast %cst_26 : f32 to vector<8x16xf32>
    %c0_27 = arith.constant 0 : index
    %c0_28 = arith.constant 0 : index
    %26 = vector.load %arg0[%c0_27, %c0_28] : memref<8x8xf32, #tpu.memory_space<vmem>>, vector<8x1xf32>
    %c0_29 = arith.constant 0 : index
    %c1_30 = arith.constant 1 : index
    %27 = vector.load %arg0[%c0_29, %c1_30] : memref<8x8xf32, #tpu.memory_space<vmem>>, vector<8x1xf32>
    %c0_31 = arith.constant 0 : index
    %c2 = arith.constant 2 : index
    %28 = vector.load %arg0[%c0_31, %c2] : memref<8x8xf32, #tpu.memory_space<vmem>>, vector<8x1xf32>
    %c0_32 = arith.constant 0 : index
    %c3 = arith.constant 3 : index
    %29 = vector.load %arg0[%c0_32, %c3] : memref<8x8xf32, #tpu.memory_space<vmem>>, vector<8x1xf32>
    %c0_33 = arith.constant 0 : index
    %c4 = arith.constant 4 : index
    %30 = vector.load %arg0[%c0_33, %c4] : memref<8x8xf32, #tpu.memory_space<vmem>>, vector<8x1xf32>
    %c0_34 = arith.constant 0 : index
    %c5 = arith.constant 5 : index
    %31 = vector.load %arg0[%c0_34, %c5] : memref<8x8xf32, #tpu.memory_space<vmem>>, vector<8x1xf32>
    %c0_35 = arith.constant 0 : index
    %c6 = arith.constant 6 : index
    %32 = vector.load %arg0[%c0_35, %c6] : memref<8x8xf32, #tpu.memory_space<vmem>>, vector<8x1xf32>
    %c0_36 = arith.constant 0 : index
    %c7 = arith.constant 7 : index
    %33 = vector.load %arg0[%c0_36, %c7] : memref<8x8xf32, #tpu.memory_space<vmem>>, vector<8x1xf32>
    %34 = vector.broadcast %26 : vector<8x1xf32> to vector<8x64xf32>
    %35 = vector.broadcast %1 : vector<1x64xf32> to vector<8x64xf32>
    %36 = arith.mulf %34, %35 : vector<8x64xf32>
    %37 = arith.addf %36, %17 : vector<8x64xf32>
    %38 = vector.broadcast %27 : vector<8x1xf32> to vector<8x64xf32>
    %39 = vector.broadcast %1 : vector<1x64xf32> to vector<8x64xf32>
    %40 = arith.mulf %38, %39 : vector<8x64xf32>
    %41 = arith.addf %40, %17 : vector<8x64xf32>
    %42 = vector.broadcast %28 : vector<8x1xf32> to vector<8x64xf32>
    %43 = vector.broadcast %1 : vector<1x64xf32> to vector<8x64xf32>
    %44 = arith.mulf %42, %43 : vector<8x64xf32>
    %45 = arith.addf %44, %17 : vector<8x64xf32>
    %46 = vector.broadcast %29 : vector<8x1xf32> to vector<8x64xf32>
    %47 = vector.broadcast %1 : vector<1x64xf32> to vector<8x64xf32>
    %48 = arith.mulf %46, %47 : vector<8x64xf32>
    %49 = arith.addf %48, %17 : vector<8x64xf32>
    %50 = vector.broadcast %30 : vector<8x1xf32> to vector<8x64xf32>
    %51 = vector.broadcast %1 : vector<1x64xf32> to vector<8x64xf32>
    %52 = arith.mulf %50, %51 : vector<8x64xf32>
    %53 = arith.addf %52, %17 : vector<8x64xf32>
    %54 = vector.broadcast %31 : vector<8x1xf32> to vector<8x64xf32>
    %55 = vector.broadcast %1 : vector<1x64xf32> to vector<8x64xf32>
    %56 = arith.mulf %54, %55 : vector<8x64xf32>
    %57 = arith.addf %56, %17 : vector<8x64xf32>
    %58 = vector.broadcast %32 : vector<8x1xf32> to vector<8x64xf32>
    %59 = vector.broadcast %1 : vector<1x64xf32> to vector<8x64xf32>
    %60 = arith.mulf %58, %59 : vector<8x64xf32>
    %61 = arith.addf %60, %17 : vector<8x64xf32>
    %62 = vector.broadcast %33 : vector<8x1xf32> to vector<8x64xf32>
    %63 = vector.broadcast %1 : vector<1x64xf32> to vector<8x64xf32>
    %64 = arith.mulf %62, %63 : vector<8x64xf32>
    %65 = arith.addf %64, %17 : vector<8x64xf32>
    %cst_37 = arith.constant dense<0.000000e+00> : vector<8x64xf32>
    %66 = tpu.matmul %22, %5, %cst_37 {dimension_numbers = #tpu.dot_dimension_numbers<[1], [0], [0], [1], [0, 0, 1, 1], [], []>} : vector<8x16xf32>, vector<16x64xf32>, vector<8x64xf32> -> vector<8x64xf32>
    %67 = arith.addf %37, %66 : vector<8x64xf32>
    %68 = arith.negf %67 : vector<8x64xf32>
    %69 = math.exp %68 : vector<8x64xf32>
    %cst_38 = arith.constant 1.000000e+00 : f32
    %70 = vector.broadcast %cst_38 : f32 to vector<8x64xf32>
    %71 = arith.addf %70, %69 : vector<8x64xf32>
    %72 = arith.divf %70, %71 : vector<8x64xf32>
    %73 = vector.extract_strided_slice %72 {offsets = [0, 0], sizes = [8, 16], strides = [1, 1]} : vector<8x64xf32> to vector<8x16xf32>
    %74 = vector.extract_strided_slice %72 {offsets = [0, 16], sizes = [8, 16], strides = [1, 1]} : vector<8x64xf32> to vector<8x16xf32>
    %75 = vector.extract_strided_slice %72 {offsets = [0, 48], sizes = [8, 16], strides = [1, 1]} : vector<8x64xf32> to vector<8x16xf32>
    %76 = vector.extract_strided_slice %67 {offsets = [0, 32], sizes = [8, 16], strides = [1, 1]} : vector<8x64xf32> to vector<8x16xf32>
    %77 = math.tanh %76 : vector<8x16xf32>
    %78 = arith.mulf %74, %24 : vector<8x16xf32>
    %79 = arith.mulf %73, %77 : vector<8x16xf32>
    %80 = arith.addf %78, %79 : vector<8x16xf32>
    %81 = math.tanh %80 : vector<8x16xf32>
    %82 = arith.mulf %75, %81 : vector<8x16xf32>
    %83 = vector.broadcast %9 : vector<1x16xf32> to vector<8x16xf32>
    %84 = arith.mulf %82, %83 : vector<8x16xf32>
    %cst_39 = arith.constant dense<0.000000e+00> : vector<8xf32>
    %85 = vector.multi_reduction <add>, %84, %cst_39 [1] : vector<8x16xf32> to vector<8xf32>
    %86 = vector.shape_cast %85 : vector<8xf32> to vector<8x1xf32>
    %87 = vector.broadcast %12 : f32 to vector<8x1xf32>
    %88 = arith.addf %86, %87 : vector<8x1xf32>
    %89 = arith.addf %88, %26 : vector<8x1xf32>
    %90 = vector.broadcast %89 : vector<8x1xf32> to vector<8x64xf32>
    %91 = vector.broadcast %3 : vector<1x64xf32> to vector<8x64xf32>
    %92 = arith.mulf %90, %91 : vector<8x64xf32>
    %93 = arith.addf %92, %21 : vector<8x64xf32>
    %cst_40 = arith.constant dense<0.000000e+00> : vector<8x64xf32>
    %94 = tpu.matmul %82, %5, %cst_40 {dimension_numbers = #tpu.dot_dimension_numbers<[1], [0], [0], [1], [0, 0, 1, 1], [], []>} : vector<8x16xf32>, vector<16x64xf32>, vector<8x64xf32> -> vector<8x64xf32>
    %95 = arith.addf %41, %94 : vector<8x64xf32>
    %96 = arith.negf %95 : vector<8x64xf32>
    %97 = math.exp %96 : vector<8x64xf32>
    %cst_41 = arith.constant 1.000000e+00 : f32
    %98 = vector.broadcast %cst_41 : f32 to vector<8x64xf32>
    %99 = arith.addf %98, %97 : vector<8x64xf32>
    %100 = arith.divf %98, %99 : vector<8x64xf32>
    %101 = vector.extract_strided_slice %100 {offsets = [0, 0], sizes = [8, 16], strides = [1, 1]} : vector<8x64xf32> to vector<8x16xf32>
    %102 = vector.extract_strided_slice %100 {offsets = [0, 16], sizes = [8, 16], strides = [1, 1]} : vector<8x64xf32> to vector<8x16xf32>
    %103 = vector.extract_strided_slice %100 {offsets = [0, 48], sizes = [8, 16], strides = [1, 1]} : vector<8x64xf32> to vector<8x16xf32>
    %104 = vector.extract_strided_slice %95 {offsets = [0, 32], sizes = [8, 16], strides = [1, 1]} : vector<8x64xf32> to vector<8x16xf32>
    %105 = math.tanh %104 : vector<8x16xf32>
    %106 = arith.mulf %102, %80 : vector<8x16xf32>
    %107 = arith.mulf %101, %105 : vector<8x16xf32>
    %108 = arith.addf %106, %107 : vector<8x16xf32>
    %109 = math.tanh %108 : vector<8x16xf32>
    %110 = arith.mulf %103, %109 : vector<8x16xf32>
    %111 = vector.broadcast %9 : vector<1x16xf32> to vector<8x16xf32>
    %112 = arith.mulf %110, %111 : vector<8x16xf32>
    %cst_42 = arith.constant dense<0.000000e+00> : vector<8xf32>
    %113 = vector.multi_reduction <add>, %112, %cst_42 [1] : vector<8x16xf32> to vector<8xf32>
    %114 = vector.shape_cast %113 : vector<8xf32> to vector<8x1xf32>
    %115 = vector.broadcast %12 : f32 to vector<8x1xf32>
    %116 = arith.addf %114, %115 : vector<8x1xf32>
    %117 = arith.addf %116, %27 : vector<8x1xf32>
    %118 = vector.broadcast %117 : vector<8x1xf32> to vector<8x64xf32>
    %119 = vector.broadcast %3 : vector<1x64xf32> to vector<8x64xf32>
    %120 = arith.mulf %118, %119 : vector<8x64xf32>
    %121 = arith.addf %120, %21 : vector<8x64xf32>
    %cst_43 = arith.constant dense<0.000000e+00> : vector<8x64xf32>
    %122 = tpu.matmul %23, %7, %cst_43 {dimension_numbers = #tpu.dot_dimension_numbers<[1], [0], [0], [1], [0, 0, 1, 1], [], []>} : vector<8x16xf32>, vector<16x64xf32>, vector<8x64xf32> -> vector<8x64xf32>
    %123 = arith.addf %93, %122 : vector<8x64xf32>
    %124 = arith.negf %123 : vector<8x64xf32>
    %125 = math.exp %124 : vector<8x64xf32>
    %cst_44 = arith.constant 1.000000e+00 : f32
    %126 = vector.broadcast %cst_44 : f32 to vector<8x64xf32>
    %127 = arith.addf %126, %125 : vector<8x64xf32>
    %128 = arith.divf %126, %127 : vector<8x64xf32>
    %129 = vector.extract_strided_slice %128 {offsets = [0, 0], sizes = [8, 16], strides = [1, 1]} : vector<8x64xf32> to vector<8x16xf32>
    %130 = vector.extract_strided_slice %128 {offsets = [0, 16], sizes = [8, 16], strides = [1, 1]} : vector<8x64xf32> to vector<8x16xf32>
    %131 = vector.extract_strided_slice %128 {offsets = [0, 48], sizes = [8, 16], strides = [1, 1]} : vector<8x64xf32> to vector<8x16xf32>
    %132 = vector.extract_strided_slice %123 {offsets = [0, 32], sizes = [8, 16], strides = [1, 1]} : vector<8x64xf32> to vector<8x16xf32>
    %133 = math.tanh %132 : vector<8x16xf32>
    %134 = arith.mulf %130, %25 : vector<8x16xf32>
    %135 = arith.mulf %129, %133 : vector<8x16xf32>
    %136 = arith.addf %134, %135 : vector<8x16xf32>
    %137 = math.tanh %136 : vector<8x16xf32>
    %138 = arith.mulf %131, %137 : vector<8x16xf32>
    %cst_45 = arith.constant dense<0.000000e+00> : vector<8x64xf32>
    %139 = tpu.matmul %110, %5, %cst_45 {dimension_numbers = #tpu.dot_dimension_numbers<[1], [0], [0], [1], [0, 0, 1, 1], [], []>} : vector<8x16xf32>, vector<16x64xf32>, vector<8x64xf32> -> vector<8x64xf32>
    %140 = arith.addf %45, %139 : vector<8x64xf32>
    %141 = arith.negf %140 : vector<8x64xf32>
    %142 = math.exp %141 : vector<8x64xf32>
    %cst_46 = arith.constant 1.000000e+00 : f32
    %143 = vector.broadcast %cst_46 : f32 to vector<8x64xf32>
    %144 = arith.addf %143, %142 : vector<8x64xf32>
    %145 = arith.divf %143, %144 : vector<8x64xf32>
    %146 = vector.extract_strided_slice %145 {offsets = [0, 0], sizes = [8, 16], strides = [1, 1]} : vector<8x64xf32> to vector<8x16xf32>
    %147 = vector.extract_strided_slice %145 {offsets = [0, 16], sizes = [8, 16], strides = [1, 1]} : vector<8x64xf32> to vector<8x16xf32>
    %148 = vector.extract_strided_slice %145 {offsets = [0, 48], sizes = [8, 16], strides = [1, 1]} : vector<8x64xf32> to vector<8x16xf32>
    %149 = vector.extract_strided_slice %140 {offsets = [0, 32], sizes = [8, 16], strides = [1, 1]} : vector<8x64xf32> to vector<8x16xf32>
    %150 = math.tanh %149 : vector<8x16xf32>
    %151 = arith.mulf %147, %108 : vector<8x16xf32>
    %152 = arith.mulf %146, %150 : vector<8x16xf32>
    %153 = arith.addf %151, %152 : vector<8x16xf32>
    %154 = math.tanh %153 : vector<8x16xf32>
    %155 = arith.mulf %148, %154 : vector<8x16xf32>
    %156 = vector.broadcast %9 : vector<1x16xf32> to vector<8x16xf32>
    %157 = arith.mulf %155, %156 : vector<8x16xf32>
    %cst_47 = arith.constant dense<0.000000e+00> : vector<8xf32>
    %158 = vector.multi_reduction <add>, %157, %cst_47 [1] : vector<8x16xf32> to vector<8xf32>
    %159 = vector.shape_cast %158 : vector<8xf32> to vector<8x1xf32>
    %160 = vector.broadcast %12 : f32 to vector<8x1xf32>
    %161 = arith.addf %159, %160 : vector<8x1xf32>
    %162 = arith.addf %161, %28 : vector<8x1xf32>
    %163 = vector.broadcast %162 : vector<8x1xf32> to vector<8x64xf32>
    %164 = vector.broadcast %3 : vector<1x64xf32> to vector<8x64xf32>
    %165 = arith.mulf %163, %164 : vector<8x64xf32>
    %166 = arith.addf %165, %21 : vector<8x64xf32>
    %cst_48 = arith.constant dense<0.000000e+00> : vector<8x64xf32>
    %167 = tpu.matmul %138, %7, %cst_48 {dimension_numbers = #tpu.dot_dimension_numbers<[1], [0], [0], [1], [0, 0, 1, 1], [], []>} : vector<8x16xf32>, vector<16x64xf32>, vector<8x64xf32> -> vector<8x64xf32>
    %168 = arith.addf %121, %167 : vector<8x64xf32>
    %169 = arith.negf %168 : vector<8x64xf32>
    %170 = math.exp %169 : vector<8x64xf32>
    %cst_49 = arith.constant 1.000000e+00 : f32
    %171 = vector.broadcast %cst_49 : f32 to vector<8x64xf32>
    %172 = arith.addf %171, %170 : vector<8x64xf32>
    %173 = arith.divf %171, %172 : vector<8x64xf32>
    %174 = vector.extract_strided_slice %173 {offsets = [0, 0], sizes = [8, 16], strides = [1, 1]} : vector<8x64xf32> to vector<8x16xf32>
    %175 = vector.extract_strided_slice %173 {offsets = [0, 16], sizes = [8, 16], strides = [1, 1]} : vector<8x64xf32> to vector<8x16xf32>
    %176 = vector.extract_strided_slice %173 {offsets = [0, 48], sizes = [8, 16], strides = [1, 1]} : vector<8x64xf32> to vector<8x16xf32>
    %177 = vector.extract_strided_slice %168 {offsets = [0, 32], sizes = [8, 16], strides = [1, 1]} : vector<8x64xf32> to vector<8x16xf32>
    %178 = math.tanh %177 : vector<8x16xf32>
    %179 = arith.mulf %175, %136 : vector<8x16xf32>
    %180 = arith.mulf %174, %178 : vector<8x16xf32>
    %181 = arith.addf %179, %180 : vector<8x16xf32>
    %182 = math.tanh %181 : vector<8x16xf32>
    %183 = arith.mulf %176, %182 : vector<8x16xf32>
    %cst_50 = arith.constant dense<0.000000e+00> : vector<8x64xf32>
    %184 = tpu.matmul %155, %5, %cst_50 {dimension_numbers = #tpu.dot_dimension_numbers<[1], [0], [0], [1], [0, 0, 1, 1], [], []>} : vector<8x16xf32>, vector<16x64xf32>, vector<8x64xf32> -> vector<8x64xf32>
    %185 = arith.addf %49, %184 : vector<8x64xf32>
    %186 = arith.negf %185 : vector<8x64xf32>
    %187 = math.exp %186 : vector<8x64xf32>
    %cst_51 = arith.constant 1.000000e+00 : f32
    %188 = vector.broadcast %cst_51 : f32 to vector<8x64xf32>
    %189 = arith.addf %188, %187 : vector<8x64xf32>
    %190 = arith.divf %188, %189 : vector<8x64xf32>
    %191 = vector.extract_strided_slice %190 {offsets = [0, 0], sizes = [8, 16], strides = [1, 1]} : vector<8x64xf32> to vector<8x16xf32>
    %192 = vector.extract_strided_slice %190 {offsets = [0, 16], sizes = [8, 16], strides = [1, 1]} : vector<8x64xf32> to vector<8x16xf32>
    %193 = vector.extract_strided_slice %190 {offsets = [0, 48], sizes = [8, 16], strides = [1, 1]} : vector<8x64xf32> to vector<8x16xf32>
    %194 = vector.extract_strided_slice %185 {offsets = [0, 32], sizes = [8, 16], strides = [1, 1]} : vector<8x64xf32> to vector<8x16xf32>
    %195 = math.tanh %194 : vector<8x16xf32>
    %196 = arith.mulf %192, %153 : vector<8x16xf32>
    %197 = arith.mulf %191, %195 : vector<8x16xf32>
    %198 = arith.addf %196, %197 : vector<8x16xf32>
    %199 = math.tanh %198 : vector<8x16xf32>
    %200 = arith.mulf %193, %199 : vector<8x16xf32>
    %201 = vector.broadcast %9 : vector<1x16xf32> to vector<8x16xf32>
    %202 = arith.mulf %200, %201 : vector<8x16xf32>
    %cst_52 = arith.constant dense<0.000000e+00> : vector<8xf32>
    %203 = vector.multi_reduction <add>, %202, %cst_52 [1] : vector<8x16xf32> to vector<8xf32>
    %204 = vector.shape_cast %203 : vector<8xf32> to vector<8x1xf32>
    %205 = vector.broadcast %12 : f32 to vector<8x1xf32>
    %206 = arith.addf %204, %205 : vector<8x1xf32>
    %207 = arith.addf %206, %29 : vector<8x1xf32>
    %208 = vector.broadcast %207 : vector<8x1xf32> to vector<8x64xf32>
    %209 = vector.broadcast %3 : vector<1x64xf32> to vector<8x64xf32>
    %210 = arith.mulf %208, %209 : vector<8x64xf32>
    %211 = arith.addf %210, %21 : vector<8x64xf32>
    %cst_53 = arith.constant dense<0.000000e+00> : vector<8x64xf32>
    %212 = tpu.matmul %183, %7, %cst_53 {dimension_numbers = #tpu.dot_dimension_numbers<[1], [0], [0], [1], [0, 0, 1, 1], [], []>} : vector<8x16xf32>, vector<16x64xf32>, vector<8x64xf32> -> vector<8x64xf32>
    %213 = arith.addf %166, %212 : vector<8x64xf32>
    %214 = arith.negf %213 : vector<8x64xf32>
    %215 = math.exp %214 : vector<8x64xf32>
    %cst_54 = arith.constant 1.000000e+00 : f32
    %216 = vector.broadcast %cst_54 : f32 to vector<8x64xf32>
    %217 = arith.addf %216, %215 : vector<8x64xf32>
    %218 = arith.divf %216, %217 : vector<8x64xf32>
    %219 = vector.extract_strided_slice %218 {offsets = [0, 0], sizes = [8, 16], strides = [1, 1]} : vector<8x64xf32> to vector<8x16xf32>
    %220 = vector.extract_strided_slice %218 {offsets = [0, 16], sizes = [8, 16], strides = [1, 1]} : vector<8x64xf32> to vector<8x16xf32>
    %221 = vector.extract_strided_slice %218 {offsets = [0, 48], sizes = [8, 16], strides = [1, 1]} : vector<8x64xf32> to vector<8x16xf32>
    %222 = vector.extract_strided_slice %213 {offsets = [0, 32], sizes = [8, 16], strides = [1, 1]} : vector<8x64xf32> to vector<8x16xf32>
    %223 = math.tanh %222 : vector<8x16xf32>
    %224 = arith.mulf %220, %181 : vector<8x16xf32>
    %225 = arith.mulf %219, %223 : vector<8x16xf32>
    %226 = arith.addf %224, %225 : vector<8x16xf32>
    %227 = math.tanh %226 : vector<8x16xf32>
    %228 = arith.mulf %221, %227 : vector<8x16xf32>
    %cst_55 = arith.constant dense<0.000000e+00> : vector<8x64xf32>
    %229 = tpu.matmul %200, %5, %cst_55 {dimension_numbers = #tpu.dot_dimension_numbers<[1], [0], [0], [1], [0, 0, 1, 1], [], []>} : vector<8x16xf32>, vector<16x64xf32>, vector<8x64xf32> -> vector<8x64xf32>
    %230 = arith.addf %53, %229 : vector<8x64xf32>
    %231 = arith.negf %230 : vector<8x64xf32>
    %232 = math.exp %231 : vector<8x64xf32>
    %cst_56 = arith.constant 1.000000e+00 : f32
    %233 = vector.broadcast %cst_56 : f32 to vector<8x64xf32>
    %234 = arith.addf %233, %232 : vector<8x64xf32>
    %235 = arith.divf %233, %234 : vector<8x64xf32>
    %236 = vector.extract_strided_slice %235 {offsets = [0, 0], sizes = [8, 16], strides = [1, 1]} : vector<8x64xf32> to vector<8x16xf32>
    %237 = vector.extract_strided_slice %235 {offsets = [0, 16], sizes = [8, 16], strides = [1, 1]} : vector<8x64xf32> to vector<8x16xf32>
    %238 = vector.extract_strided_slice %235 {offsets = [0, 48], sizes = [8, 16], strides = [1, 1]} : vector<8x64xf32> to vector<8x16xf32>
    %239 = vector.extract_strided_slice %230 {offsets = [0, 32], sizes = [8, 16], strides = [1, 1]} : vector<8x64xf32> to vector<8x16xf32>
    %240 = math.tanh %239 : vector<8x16xf32>
    %241 = arith.mulf %237, %198 : vector<8x16xf32>
    %242 = arith.mulf %236, %240 : vector<8x16xf32>
    %243 = arith.addf %241, %242 : vector<8x16xf32>
    %244 = math.tanh %243 : vector<8x16xf32>
    %245 = arith.mulf %238, %244 : vector<8x16xf32>
    %246 = vector.broadcast %9 : vector<1x16xf32> to vector<8x16xf32>
    %247 = arith.mulf %245, %246 : vector<8x16xf32>
    %cst_57 = arith.constant dense<0.000000e+00> : vector<8xf32>
    %248 = vector.multi_reduction <add>, %247, %cst_57 [1] : vector<8x16xf32> to vector<8xf32>
    %249 = vector.shape_cast %248 : vector<8xf32> to vector<8x1xf32>
    %250 = vector.broadcast %12 : f32 to vector<8x1xf32>
    %251 = arith.addf %249, %250 : vector<8x1xf32>
    %252 = arith.addf %251, %30 : vector<8x1xf32>
    %253 = vector.broadcast %252 : vector<8x1xf32> to vector<8x64xf32>
    %254 = vector.broadcast %3 : vector<1x64xf32> to vector<8x64xf32>
    %255 = arith.mulf %253, %254 : vector<8x64xf32>
    %256 = arith.addf %255, %21 : vector<8x64xf32>
    %cst_58 = arith.constant dense<0.000000e+00> : vector<8x64xf32>
    %257 = tpu.matmul %228, %7, %cst_58 {dimension_numbers = #tpu.dot_dimension_numbers<[1], [0], [0], [1], [0, 0, 1, 1], [], []>} : vector<8x16xf32>, vector<16x64xf32>, vector<8x64xf32> -> vector<8x64xf32>
    %258 = arith.addf %211, %257 : vector<8x64xf32>
    %259 = arith.negf %258 : vector<8x64xf32>
    %260 = math.exp %259 : vector<8x64xf32>
    %cst_59 = arith.constant 1.000000e+00 : f32
    %261 = vector.broadcast %cst_59 : f32 to vector<8x64xf32>
    %262 = arith.addf %261, %260 : vector<8x64xf32>
    %263 = arith.divf %261, %262 : vector<8x64xf32>
    %264 = vector.extract_strided_slice %263 {offsets = [0, 0], sizes = [8, 16], strides = [1, 1]} : vector<8x64xf32> to vector<8x16xf32>
    %265 = vector.extract_strided_slice %263 {offsets = [0, 16], sizes = [8, 16], strides = [1, 1]} : vector<8x64xf32> to vector<8x16xf32>
    %266 = vector.extract_strided_slice %263 {offsets = [0, 48], sizes = [8, 16], strides = [1, 1]} : vector<8x64xf32> to vector<8x16xf32>
    %267 = vector.extract_strided_slice %258 {offsets = [0, 32], sizes = [8, 16], strides = [1, 1]} : vector<8x64xf32> to vector<8x16xf32>
    %268 = math.tanh %267 : vector<8x16xf32>
    %269 = arith.mulf %265, %226 : vector<8x16xf32>
    %270 = arith.mulf %264, %268 : vector<8x16xf32>
    %271 = arith.addf %269, %270 : vector<8x16xf32>
    %272 = math.tanh %271 : vector<8x16xf32>
    %273 = arith.mulf %266, %272 : vector<8x16xf32>
    %cst_60 = arith.constant dense<0.000000e+00> : vector<8x64xf32>
    %274 = tpu.matmul %245, %5, %cst_60 {dimension_numbers = #tpu.dot_dimension_numbers<[1], [0], [0], [1], [0, 0, 1, 1], [], []>} : vector<8x16xf32>, vector<16x64xf32>, vector<8x64xf32> -> vector<8x64xf32>
    %275 = arith.addf %57, %274 : vector<8x64xf32>
    %276 = arith.negf %275 : vector<8x64xf32>
    %277 = math.exp %276 : vector<8x64xf32>
    %cst_61 = arith.constant 1.000000e+00 : f32
    %278 = vector.broadcast %cst_61 : f32 to vector<8x64xf32>
    %279 = arith.addf %278, %277 : vector<8x64xf32>
    %280 = arith.divf %278, %279 : vector<8x64xf32>
    %281 = vector.extract_strided_slice %280 {offsets = [0, 0], sizes = [8, 16], strides = [1, 1]} : vector<8x64xf32> to vector<8x16xf32>
    %282 = vector.extract_strided_slice %280 {offsets = [0, 16], sizes = [8, 16], strides = [1, 1]} : vector<8x64xf32> to vector<8x16xf32>
    %283 = vector.extract_strided_slice %280 {offsets = [0, 48], sizes = [8, 16], strides = [1, 1]} : vector<8x64xf32> to vector<8x16xf32>
    %284 = vector.extract_strided_slice %275 {offsets = [0, 32], sizes = [8, 16], strides = [1, 1]} : vector<8x64xf32> to vector<8x16xf32>
    %285 = math.tanh %284 : vector<8x16xf32>
    %286 = arith.mulf %282, %243 : vector<8x16xf32>
    %287 = arith.mulf %281, %285 : vector<8x16xf32>
    %288 = arith.addf %286, %287 : vector<8x16xf32>
    %289 = math.tanh %288 : vector<8x16xf32>
    %290 = arith.mulf %283, %289 : vector<8x16xf32>
    %291 = vector.broadcast %9 : vector<1x16xf32> to vector<8x16xf32>
    %292 = arith.mulf %290, %291 : vector<8x16xf32>
    %cst_62 = arith.constant dense<0.000000e+00> : vector<8xf32>
    %293 = vector.multi_reduction <add>, %292, %cst_62 [1] : vector<8x16xf32> to vector<8xf32>
    %294 = vector.shape_cast %293 : vector<8xf32> to vector<8x1xf32>
    %295 = vector.broadcast %12 : f32 to vector<8x1xf32>
    %296 = arith.addf %294, %295 : vector<8x1xf32>
    %297 = arith.addf %296, %31 : vector<8x1xf32>
    %298 = vector.broadcast %297 : vector<8x1xf32> to vector<8x64xf32>
    %299 = vector.broadcast %3 : vector<1x64xf32> to vector<8x64xf32>
    %300 = arith.mulf %298, %299 : vector<8x64xf32>
    %301 = arith.addf %300, %21 : vector<8x64xf32>
    %cst_63 = arith.constant dense<0.000000e+00> : vector<8x64xf32>
    %302 = tpu.matmul %273, %7, %cst_63 {dimension_numbers = #tpu.dot_dimension_numbers<[1], [0], [0], [1], [0, 0, 1, 1], [], []>} : vector<8x16xf32>, vector<16x64xf32>, vector<8x64xf32> -> vector<8x64xf32>
    %303 = arith.addf %256, %302 : vector<8x64xf32>
    %304 = arith.negf %303 : vector<8x64xf32>
    %305 = math.exp %304 : vector<8x64xf32>
    %cst_64 = arith.constant 1.000000e+00 : f32
    %306 = vector.broadcast %cst_64 : f32 to vector<8x64xf32>
    %307 = arith.addf %306, %305 : vector<8x64xf32>
    %308 = arith.divf %306, %307 : vector<8x64xf32>
    %309 = vector.extract_strided_slice %308 {offsets = [0, 0], sizes = [8, 16], strides = [1, 1]} : vector<8x64xf32> to vector<8x16xf32>
    %310 = vector.extract_strided_slice %308 {offsets = [0, 16], sizes = [8, 16], strides = [1, 1]} : vector<8x64xf32> to vector<8x16xf32>
    %311 = vector.extract_strided_slice %308 {offsets = [0, 48], sizes = [8, 16], strides = [1, 1]} : vector<8x64xf32> to vector<8x16xf32>
    %312 = vector.extract_strided_slice %303 {offsets = [0, 32], sizes = [8, 16], strides = [1, 1]} : vector<8x64xf32> to vector<8x16xf32>
    %313 = math.tanh %312 : vector<8x16xf32>
    %314 = arith.mulf %310, %271 : vector<8x16xf32>
    %315 = arith.mulf %309, %313 : vector<8x16xf32>
    %316 = arith.addf %314, %315 : vector<8x16xf32>
    %317 = math.tanh %316 : vector<8x16xf32>
    %318 = arith.mulf %311, %317 : vector<8x16xf32>
    %cst_65 = arith.constant dense<0.000000e+00> : vector<8x64xf32>
    %319 = tpu.matmul %290, %5, %cst_65 {dimension_numbers = #tpu.dot_dimension_numbers<[1], [0], [0], [1], [0, 0, 1, 1], [], []>} : vector<8x16xf32>, vector<16x64xf32>, vector<8x64xf32> -> vector<8x64xf32>
    %320 = arith.addf %61, %319 : vector<8x64xf32>
    %321 = arith.negf %320 : vector<8x64xf32>
    %322 = math.exp %321 : vector<8x64xf32>
    %cst_66 = arith.constant 1.000000e+00 : f32
    %323 = vector.broadcast %cst_66 : f32 to vector<8x64xf32>
    %324 = arith.addf %323, %322 : vector<8x64xf32>
    %325 = arith.divf %323, %324 : vector<8x64xf32>
    %326 = vector.extract_strided_slice %325 {offsets = [0, 0], sizes = [8, 16], strides = [1, 1]} : vector<8x64xf32> to vector<8x16xf32>
    %327 = vector.extract_strided_slice %325 {offsets = [0, 16], sizes = [8, 16], strides = [1, 1]} : vector<8x64xf32> to vector<8x16xf32>
    %328 = vector.extract_strided_slice %325 {offsets = [0, 48], sizes = [8, 16], strides = [1, 1]} : vector<8x64xf32> to vector<8x16xf32>
    %329 = vector.extract_strided_slice %320 {offsets = [0, 32], sizes = [8, 16], strides = [1, 1]} : vector<8x64xf32> to vector<8x16xf32>
    %330 = math.tanh %329 : vector<8x16xf32>
    %331 = arith.mulf %327, %288 : vector<8x16xf32>
    %332 = arith.mulf %326, %330 : vector<8x16xf32>
    %333 = arith.addf %331, %332 : vector<8x16xf32>
    %334 = math.tanh %333 : vector<8x16xf32>
    %335 = arith.mulf %328, %334 : vector<8x16xf32>
    %336 = vector.broadcast %9 : vector<1x16xf32> to vector<8x16xf32>
    %337 = arith.mulf %335, %336 : vector<8x16xf32>
    %cst_67 = arith.constant dense<0.000000e+00> : vector<8xf32>
    %338 = vector.multi_reduction <add>, %337, %cst_67 [1] : vector<8x16xf32> to vector<8xf32>
    %339 = vector.shape_cast %338 : vector<8xf32> to vector<8x1xf32>
    %340 = vector.broadcast %12 : f32 to vector<8x1xf32>
    %341 = arith.addf %339, %340 : vector<8x1xf32>
    %342 = arith.addf %341, %32 : vector<8x1xf32>
    %343 = vector.broadcast %342 : vector<8x1xf32> to vector<8x64xf32>
    %344 = vector.broadcast %3 : vector<1x64xf32> to vector<8x64xf32>
    %345 = arith.mulf %343, %344 : vector<8x64xf32>
    %346 = arith.addf %345, %21 : vector<8x64xf32>
    %cst_68 = arith.constant dense<0.000000e+00> : vector<8x64xf32>
    %347 = tpu.matmul %318, %7, %cst_68 {dimension_numbers = #tpu.dot_dimension_numbers<[1], [0], [0], [1], [0, 0, 1, 1], [], []>} : vector<8x16xf32>, vector<16x64xf32>, vector<8x64xf32> -> vector<8x64xf32>
    %348 = arith.addf %301, %347 : vector<8x64xf32>
    %349 = arith.negf %348 : vector<8x64xf32>
    %350 = math.exp %349 : vector<8x64xf32>
    %cst_69 = arith.constant 1.000000e+00 : f32
    %351 = vector.broadcast %cst_69 : f32 to vector<8x64xf32>
    %352 = arith.addf %351, %350 : vector<8x64xf32>
    %353 = arith.divf %351, %352 : vector<8x64xf32>
    %354 = vector.extract_strided_slice %353 {offsets = [0, 0], sizes = [8, 16], strides = [1, 1]} : vector<8x64xf32> to vector<8x16xf32>
    %355 = vector.extract_strided_slice %353 {offsets = [0, 16], sizes = [8, 16], strides = [1, 1]} : vector<8x64xf32> to vector<8x16xf32>
    %356 = vector.extract_strided_slice %353 {offsets = [0, 48], sizes = [8, 16], strides = [1, 1]} : vector<8x64xf32> to vector<8x16xf32>
    %357 = vector.extract_strided_slice %348 {offsets = [0, 32], sizes = [8, 16], strides = [1, 1]} : vector<8x64xf32> to vector<8x16xf32>
    %358 = math.tanh %357 : vector<8x16xf32>
    %359 = arith.mulf %355, %316 : vector<8x16xf32>
    %360 = arith.mulf %354, %358 : vector<8x16xf32>
    %361 = arith.addf %359, %360 : vector<8x16xf32>
    %362 = math.tanh %361 : vector<8x16xf32>
    %363 = arith.mulf %356, %362 : vector<8x16xf32>
    %cst_70 = arith.constant dense<0.000000e+00> : vector<8x64xf32>
    %364 = tpu.matmul %335, %5, %cst_70 {dimension_numbers = #tpu.dot_dimension_numbers<[1], [0], [0], [1], [0, 0, 1, 1], [], []>} : vector<8x16xf32>, vector<16x64xf32>, vector<8x64xf32> -> vector<8x64xf32>
    %365 = arith.addf %65, %364 : vector<8x64xf32>
    %366 = arith.negf %365 : vector<8x64xf32>
    %367 = math.exp %366 : vector<8x64xf32>
    %cst_71 = arith.constant 1.000000e+00 : f32
    %368 = vector.broadcast %cst_71 : f32 to vector<8x64xf32>
    %369 = arith.addf %368, %367 : vector<8x64xf32>
    %370 = arith.divf %368, %369 : vector<8x64xf32>
    %371 = vector.extract_strided_slice %370 {offsets = [0, 0], sizes = [8, 16], strides = [1, 1]} : vector<8x64xf32> to vector<8x16xf32>
    %372 = vector.extract_strided_slice %370 {offsets = [0, 16], sizes = [8, 16], strides = [1, 1]} : vector<8x64xf32> to vector<8x16xf32>
    %373 = vector.extract_strided_slice %370 {offsets = [0, 48], sizes = [8, 16], strides = [1, 1]} : vector<8x64xf32> to vector<8x16xf32>
    %374 = vector.extract_strided_slice %365 {offsets = [0, 32], sizes = [8, 16], strides = [1, 1]} : vector<8x64xf32> to vector<8x16xf32>
    %375 = math.tanh %374 : vector<8x16xf32>
    %376 = arith.mulf %372, %333 : vector<8x16xf32>
    %377 = arith.mulf %371, %375 : vector<8x16xf32>
    %378 = arith.addf %376, %377 : vector<8x16xf32>
    %379 = math.tanh %378 : vector<8x16xf32>
    %380 = arith.mulf %373, %379 : vector<8x16xf32>
    %381 = vector.broadcast %9 : vector<1x16xf32> to vector<8x16xf32>
    %382 = arith.mulf %380, %381 : vector<8x16xf32>
    %cst_72 = arith.constant dense<0.000000e+00> : vector<8xf32>
    %383 = vector.multi_reduction <add>, %382, %cst_72 [1] : vector<8x16xf32> to vector<8xf32>
    %384 = vector.shape_cast %383 : vector<8xf32> to vector<8x1xf32>
    %385 = vector.broadcast %12 : f32 to vector<8x1xf32>
    %386 = arith.addf %384, %385 : vector<8x1xf32>
    %387 = arith.addf %386, %33 : vector<8x1xf32>
    %388 = vector.broadcast %387 : vector<8x1xf32> to vector<8x64xf32>
    %389 = vector.broadcast %3 : vector<1x64xf32> to vector<8x64xf32>
    %390 = arith.mulf %388, %389 : vector<8x64xf32>
    %391 = arith.addf %390, %21 : vector<8x64xf32>
    %cst_73 = arith.constant dense<0.000000e+00> : vector<8x64xf32>
    %392 = tpu.matmul %363, %7, %cst_73 {dimension_numbers = #tpu.dot_dimension_numbers<[1], [0], [0], [1], [0, 0, 1, 1], [], []>} : vector<8x16xf32>, vector<16x64xf32>, vector<8x64xf32> -> vector<8x64xf32>
    %393 = arith.addf %346, %392 : vector<8x64xf32>
    %394 = arith.negf %393 : vector<8x64xf32>
    %395 = math.exp %394 : vector<8x64xf32>
    %cst_74 = arith.constant 1.000000e+00 : f32
    %396 = vector.broadcast %cst_74 : f32 to vector<8x64xf32>
    %397 = arith.addf %396, %395 : vector<8x64xf32>
    %398 = arith.divf %396, %397 : vector<8x64xf32>
    %399 = vector.extract_strided_slice %398 {offsets = [0, 0], sizes = [8, 16], strides = [1, 1]} : vector<8x64xf32> to vector<8x16xf32>
    %400 = vector.extract_strided_slice %398 {offsets = [0, 16], sizes = [8, 16], strides = [1, 1]} : vector<8x64xf32> to vector<8x16xf32>
    %401 = vector.extract_strided_slice %398 {offsets = [0, 48], sizes = [8, 16], strides = [1, 1]} : vector<8x64xf32> to vector<8x16xf32>
    %402 = vector.extract_strided_slice %393 {offsets = [0, 32], sizes = [8, 16], strides = [1, 1]} : vector<8x64xf32> to vector<8x16xf32>
    %403 = math.tanh %402 : vector<8x16xf32>
    %404 = arith.mulf %400, %361 : vector<8x16xf32>
    %405 = arith.mulf %399, %403 : vector<8x16xf32>
    %406 = arith.addf %404, %405 : vector<8x16xf32>
    %407 = math.tanh %406 : vector<8x16xf32>
    %408 = arith.mulf %401, %407 : vector<8x16xf32>
    %cst_75 = arith.constant dense<0.000000e+00> : vector<8x64xf32>
    %409 = tpu.matmul %408, %7, %cst_75 {dimension_numbers = #tpu.dot_dimension_numbers<[1], [0], [0], [1], [0, 0, 1, 1], [], []>} : vector<8x16xf32>, vector<16x64xf32>, vector<8x64xf32> -> vector<8x64xf32>
    %410 = arith.addf %391, %409 : vector<8x64xf32>
    %411 = arith.negf %410 : vector<8x64xf32>
    %412 = math.exp %411 : vector<8x64xf32>
    %cst_76 = arith.constant 1.000000e+00 : f32
    %413 = vector.broadcast %cst_76 : f32 to vector<8x64xf32>
    %414 = arith.addf %413, %412 : vector<8x64xf32>
    %415 = arith.divf %413, %414 : vector<8x64xf32>
    %416 = vector.extract_strided_slice %415 {offsets = [0, 0], sizes = [8, 16], strides = [1, 1]} : vector<8x64xf32> to vector<8x16xf32>
    %417 = vector.extract_strided_slice %415 {offsets = [0, 16], sizes = [8, 16], strides = [1, 1]} : vector<8x64xf32> to vector<8x16xf32>
    %418 = vector.extract_strided_slice %415 {offsets = [0, 48], sizes = [8, 16], strides = [1, 1]} : vector<8x64xf32> to vector<8x16xf32>
    %419 = vector.extract_strided_slice %410 {offsets = [0, 32], sizes = [8, 16], strides = [1, 1]} : vector<8x64xf32> to vector<8x16xf32>
    %420 = math.tanh %419 : vector<8x16xf32>
    %421 = arith.mulf %417, %406 : vector<8x16xf32>
    %422 = arith.mulf %416, %420 : vector<8x16xf32>
    %423 = arith.addf %421, %422 : vector<8x16xf32>
    %424 = math.tanh %423 : vector<8x16xf32>
    %425 = arith.mulf %418, %424 : vector<8x16xf32>
    %426 = vector.broadcast %11 : vector<1x16xf32> to vector<8x16xf32>
    %427 = arith.mulf %138, %426 : vector<8x16xf32>
    %cst_77 = arith.constant dense<0.000000e+00> : vector<8xf32>
    %428 = vector.multi_reduction <add>, %427, %cst_77 [1] : vector<8x16xf32> to vector<8xf32>
    %429 = vector.shape_cast %428 : vector<8xf32> to vector<8x1xf32>
    %430 = vector.broadcast %13 : f32 to vector<8x1xf32>
    %431 = arith.addf %429, %430 : vector<8x1xf32>
    %432 = arith.addf %431, %89 : vector<8x1xf32>
    %433 = vector.broadcast %11 : vector<1x16xf32> to vector<8x16xf32>
    %434 = arith.mulf %183, %433 : vector<8x16xf32>
    %cst_78 = arith.constant dense<0.000000e+00> : vector<8xf32>
    %435 = vector.multi_reduction <add>, %434, %cst_78 [1] : vector<8x16xf32> to vector<8xf32>
    %436 = vector.shape_cast %435 : vector<8xf32> to vector<8x1xf32>
    %437 = vector.broadcast %13 : f32 to vector<8x1xf32>
    %438 = arith.addf %436, %437 : vector<8x1xf32>
    %439 = arith.addf %438, %117 : vector<8x1xf32>
    %440 = vector.broadcast %11 : vector<1x16xf32> to vector<8x16xf32>
    %441 = arith.mulf %228, %440 : vector<8x16xf32>
    %cst_79 = arith.constant dense<0.000000e+00> : vector<8xf32>
    %442 = vector.multi_reduction <add>, %441, %cst_79 [1] : vector<8x16xf32> to vector<8xf32>
    %443 = vector.shape_cast %442 : vector<8xf32> to vector<8x1xf32>
    %444 = vector.broadcast %13 : f32 to vector<8x1xf32>
    %445 = arith.addf %443, %444 : vector<8x1xf32>
    %446 = arith.addf %445, %162 : vector<8x1xf32>
    %447 = vector.broadcast %11 : vector<1x16xf32> to vector<8x16xf32>
    %448 = arith.mulf %273, %447 : vector<8x16xf32>
    %cst_80 = arith.constant dense<0.000000e+00> : vector<8xf32>
    %449 = vector.multi_reduction <add>, %448, %cst_80 [1] : vector<8x16xf32> to vector<8xf32>
    %450 = vector.shape_cast %449 : vector<8xf32> to vector<8x1xf32>
    %451 = vector.broadcast %13 : f32 to vector<8x1xf32>
    %452 = arith.addf %450, %451 : vector<8x1xf32>
    %453 = arith.addf %452, %207 : vector<8x1xf32>
    %454 = vector.broadcast %11 : vector<1x16xf32> to vector<8x16xf32>
    %455 = arith.mulf %318, %454 : vector<8x16xf32>
    %cst_81 = arith.constant dense<0.000000e+00> : vector<8xf32>
    %456 = vector.multi_reduction <add>, %455, %cst_81 [1] : vector<8x16xf32> to vector<8xf32>
    %457 = vector.shape_cast %456 : vector<8xf32> to vector<8x1xf32>
    %458 = vector.broadcast %13 : f32 to vector<8x1xf32>
    %459 = arith.addf %457, %458 : vector<8x1xf32>
    %460 = arith.addf %459, %252 : vector<8x1xf32>
    %461 = vector.broadcast %11 : vector<1x16xf32> to vector<8x16xf32>
    %462 = arith.mulf %363, %461 : vector<8x16xf32>
    %cst_82 = arith.constant dense<0.000000e+00> : vector<8xf32>
    %463 = vector.multi_reduction <add>, %462, %cst_82 [1] : vector<8x16xf32> to vector<8xf32>
    %464 = vector.shape_cast %463 : vector<8xf32> to vector<8x1xf32>
    %465 = vector.broadcast %13 : f32 to vector<8x1xf32>
    %466 = arith.addf %464, %465 : vector<8x1xf32>
    %467 = arith.addf %466, %297 : vector<8x1xf32>
    %468 = vector.broadcast %11 : vector<1x16xf32> to vector<8x16xf32>
    %469 = arith.mulf %408, %468 : vector<8x16xf32>
    %cst_83 = arith.constant dense<0.000000e+00> : vector<8xf32>
    %470 = vector.multi_reduction <add>, %469, %cst_83 [1] : vector<8x16xf32> to vector<8xf32>
    %471 = vector.shape_cast %470 : vector<8xf32> to vector<8x1xf32>
    %472 = vector.broadcast %13 : f32 to vector<8x1xf32>
    %473 = arith.addf %471, %472 : vector<8x1xf32>
    %474 = arith.addf %473, %342 : vector<8x1xf32>
    %475 = vector.broadcast %11 : vector<1x16xf32> to vector<8x16xf32>
    %476 = arith.mulf %425, %475 : vector<8x16xf32>
    %cst_84 = arith.constant dense<0.000000e+00> : vector<8xf32>
    %477 = vector.multi_reduction <add>, %476, %cst_84 [1] : vector<8x16xf32> to vector<8xf32>
    %478 = vector.shape_cast %477 : vector<8xf32> to vector<8x1xf32>
    %479 = vector.broadcast %13 : f32 to vector<8x1xf32>
    %480 = arith.addf %478, %479 : vector<8x1xf32>
    %481 = arith.addf %480, %387 : vector<8x1xf32>
    %482 = tpu.concatenate %432, %439, %446, %453, %460, %467, %474, %481 in 1 : vector<8x1xf32>, vector<8x1xf32>, vector<8x1xf32>, vector<8x1xf32>, vector<8x1xf32>, vector<8x1xf32>, vector<8x1xf32>, vector<8x1xf32> -> vector<8x8xf32>
    %c0_85 = arith.constant 0 : index
    %c0_86 = arith.constant 0 : index
    %483 = vector.load %arg6[%c0_85, %c0_86] : memref<8x8xf32, #tpu.memory_space<vmem>>, vector<8x8xf32>
    tpu.vector_store %arg6[%c0_85, %c0_86], %482 {strides = array<i32>} : memref<8x8xf32, #tpu.memory_space<vmem>>, vector<8x8xf32>,
    return
  }
}

</mosaic_0001>

<bundles_post_ra>
// kernel: tpu_custom_call.1
= control target key start
LH: loop header
LB: loop body
LE: loop exit
PB: predicated region body
PF: predicated region fallthrough
CT: control target
= control target key end

     0   :  { %11 = vsyncpa [#allocation3], 0  ;;  %s2988_s0 = inlined_call_operand.hbm [shape: f32[8,8], index: 0, kind: input, shape index: {}]   ;;  %s2989_s1 = inlined_call_operand.hbm [shape: f32[2,1,64], index: 1, kind: input, shape index: {}]   ;;  %s2990_s2 = inlined_call_operand.hbm [shape: f32[2,16,64], index: 2, kind: input, shape index: {}]   ;;  %s2991_s3 = inlined_call_operand.vmem [shape: f32[2,1,64], index: 3, kind: input, shape index: {}]   ;;  %s2992_s4 = inlined_call_operand.vmem [shape: f32[2,1,16], index: 4, kind: input, shape index: {}]   ;;  %s2993_s5 = inlined_call_operand.vmem [shape: f32[2], index: 5, kind: input, shape index: {}]   ;;  %s2994_s6 = inlined_call_operand.hbm [shape: f32[8,8], index: 6, kind: output, shape index: {}]  }
   0x1   :  { %12 = vsyncpa [#allocation7], 0 }
   0x2   :  { %13 = vsyncpa [#allocation5], 0 }
   0x3   :  { %14 = vsyncpa [#allocation4], 0  ;;  %s2495_s21 = smov [#allocation6]  }
   0x4   :  { %s30_s22 = sshll.u32 %s2495_s21, 4  ;;  %s31_s22 = int_to_ptr.vmem [resolvable:$true] %s30_s22 }
   0x5   :  { %s2403_s23 = scalar_lea.vmem %s31_s22, 32  ;;  %p2408_p1 = scmp.lt.s32.totalorder %s31_s22, %s31_s22 }
   0x6   :  { %p2404_p0 = scmp.ne.s32.totalorder %s31_s22, %s2403_s23  ;;  %p2409_p2 = scmp.lt.s32.totalorder %s2403_s23, %s2403_s23 }
   0x8   :  { %p2410_p3 = por %p2409_p2, %p2408_p1 }
   0xa   :  { %p2411_p4 = pnand %p2410_p3, %p2404_p0 }
   0xc   :  { %2414 = shalt.err (!%p2411_p4)
}
   0xd   :  { %s2496_s24 = smov 16   ;;  %s2497_s25 = smov 1  }
   0xe   :  { %36 = dma.hbm_to_vmem [thread:$0]  %s2989_s1, 32, %s31_s22, [#allocation7], %s2496_s24, %s2496_s24, %s2497_s25  }
   0xf   :  { %s2498_s28 = smov [#allocation2]   ;;  %s2499_s30 = smov [#allocation8]  }
  0x10   :  { %s21_s29 = sshll.u32 %s2498_s28, 4  ;;  %s42_s7 = sshll.u32 %s2499_s30, 4  ;;  %s22_s29 = int_to_ptr.vmem [resolvable:$true] %s21_s29  ;;  %s43_s7 = int_to_ptr.vmem [resolvable:$true] %s42_s7 }
  0x11   :  { %s2423_s8 = scalar_lea.vmem %s22_s29, 128  ;;  %p2428_p6 = scmp.lt.s32.totalorder %s22_s29, %s22_s29 }
  0x12   :  { %p2424_p5 = scmp.ne.s32.totalorder %s22_s29, %s2423_s8  ;;  %p2429_p7 = scmp.lt.s32.totalorder %s2423_s8, %s2423_s8 }
  0x14   :  { %p2430_p8 = por %p2429_p7, %p2428_p6 }
  0x16   :  { %p2431_p9 = pnand %p2430_p8, %p2424_p5 }
  0x18   :  { %2434 = shalt.err (!%p2431_p9)
}
  0x19   :  { %24 = dma.hbm_to_vmem [thread:$0]  %s2988_s0, 128, %s22_s29, [#allocation3]  }
  0x1a   :  { %s59_s1 = sshll.u32 %s2993_s5, 4  ;;  %s2443_s13 = scalar_lea.vmem %s43_s7, 512  ;;  %s60_s1 = int_to_ptr.vmem [resolvable:$true] %s59_s1 }
  0x1b   :  { %p2444_p10 = scmp.ne.s32.totalorder %s43_s7, %s2443_s13  ;;  %p2448_p11 = scmp.lt.s32.totalorder %s43_s7, %s43_s7 }
  0x1c   :  { %p2449_p12 = scmp.lt.s32.totalorder %s2443_s13, %s2443_s13 }
  0x1e   :  { %p2450_p13 = por %p2449_p12, %p2448_p11 }
  0x20   :  { %p2451_p0 = pnand %p2450_p13, %p2444_p10 }
  0x22   :  { %2454 = shalt.err (!%p2451_p0)
}
  0x23   :  { %s2500_s14 = smov 128   ;;  %s2501_s15 = smov 8  }
  0x24   :  { %48 = dma.hbm_to_vmem [thread:$0]  %s2990_s2, 512, %s43_s7, [#allocation7], %s2500_s14, %s2500_s14, %s2501_s15  }
  0x25   :  { %s2455_s0 = scalar_lea.vmem %s60_s1, 16  ;;  %p2460_p2 = scmp.lt.s32.totalorder %s60_s1, %s60_s1 }
  0x26   :  { %p2456_p1 = scmp.ne.s32.totalorder %s60_s1, %s2455_s0  ;;  %p2461_p3 = scmp.lt.s32.totalorder %s2455_s0, %s2455_s0 }
  0x28   :  { %p2462_p4 = por %p2461_p3, %p2460_p2 }
  0x2a   :  { %p2463_p5 = pnand %p2462_p4, %p2456_p1 }
  0x2c   :  { %2466 = shalt.err (!%p2463_p5)
}
  0x2d   :  { %s2502_s5 = smov [#allocation9]  }
  0x2e   :  { %62 = dma.vmem_to_smem %s60_s1, 16, %s2502_s5, [#allocation5]  }
  0x2f   :  { %2487 = dma.done.wait [#allocation3], 128  }
  0x30   :  { %2488 = vsyncadd [#allocation3], 4294967168 }
  0x31   :  { %2489 = dma.done.wait [#allocation7], 544  }
  0x32   :  { %2490 = vsyncadd [#allocation7], 4294966752 }
  0x33   :  { %2491 = dma.done.wait [#allocation5], 16  }
  0x34   :  { %2492 = vsyncadd [#allocation5], 4294967280 }
  0x35   :  { %75 = sfence }
  0x36   :  { %v2567_v0 = vld [vmem:[#allocation8 + $0x8] sm:$0xff]  ;;  %v2569_v1 = vld [vmem:[#allocation2] sm:$0xff]  ;;  %v2503_v2 = vmov 0.0   ;;  %v2572_v3 = vld [vmem:[#allocation8] sm:$0xff]  ;;  %vm2504_vm0 = vmmov 0   ;;  %v2505_v4 = vmov 0  }
  0x37   :  { %2114 = vmatprep.subr.mxu0 %v2503_v2  ;;  %2118 = vmatprep.mubr.msk.f32.mxu0 %vm2504_vm0, %v2503_v2  ;;  %v2591_v6 = vld [vmem:[#allocation6] ss:$0 sm:$0xff]  ;;  %v2597_v8 = vld [vmem:[%s2991_s3] ss:$0 sm:$0xff]  ;;  %s2506_s19 = smov 96   ;;  %s2507_s22 = smov 48  }
  0x38   :  { %2115 = vmatpush3.msra.mxu0 %v2567_v0  ;;  %2249 = vset.pattern.permute.xlu0 %v2505_v4  ;;  %v2034_v20 = vld [vmem:[%s2992_s4] ss:$0 sm:$0xff]  ;;  %s2508_s23 = smov 32   ;;  %v2610_v25 = vld [vmem:[#allocation8 + $0x18] sm:$0xff]  ;;  %s2509_s25 = smov 80   ;;  %vm160_vm1 = vcmask 130048  }
  0x39   :  { %2116 = vmatprep.subr.mxu0 %v2503_v2  ;;  %107 = vperm.xlu0 %2249, %v2569_v1   ;;  %v2612_v26 = vld [vmem:[#allocation8 + $0x10] sm:$0xff]  ;;  %v2510_v34 = vmov 1   ;;  %s87_s26 = sld [smem:[#allocation9]]  ;;  %v2646_v43 = vld [vmem:[#allocation6 + $0x1] ss:$0 sm:$0xff]  ;;  %vm1994_vm2 = vcmask 7168  }
  0x3a   :  { %2117 = vmatpush3.msra.mxu0 %v2572_v3  ;;  %2121 = vmatprep.subr.mxu1 %v2503_v2  ;;  %v2651_v45 = vld [vmem:[%s2991_s3 + $0x1] ss:$0 sm:$0xff]  ;;  %vm1996_vm3 = vcmask 15360   ;;  %vm1998_vm4 = vcmask 23552   ;;  %vm2000_vm5 = vcmask 31744   ;;  %vm2002_vm6 = vcmask 39936  }
  0x3b   :  { %2119 = vmatmul.mubr.f32.vlgmr.msra.gmra.mxu0 %v2503_v2  ;;  %2122 = vmatpush3.msra.mxu1 %v2567_v0  ;;  %vm2004_vm7 = vcmask 48128   ;;  %vm2006_vm8 = vcmask 56320   ;;  %vm2008_vm9 = vcmask 64512  }
  0x3c   :  { %2123 = vmatprep.subr.mxu1 %v2503_v2  ;;  %2125 = vmatprep.mubr.msk.f32.mxu1 %vm2504_vm0, %v2503_v2 }
  0x3d   :  { %2124 = vmatpush3.msra.mxu1 %v2572_v3  ;;  %2128 = vmatprep.subr.mxu0 %v2503_v2 }
  0x3e   :  { %2132 = vmatprep.mubr.msk.f32.mxu0 %vm2504_vm0, %v2503_v2  ;;  %2135 = vmatprep.subr.mxu1 %v2503_v2 }
  0x3f   :  { %2129 = vmatpush3.msra.mxu0 %v2610_v25  ;;  %2251 = vset.pattern.permute.xlu1 %v2510_v34  ;;  %v2638_v35 = vstv %s87_s26 }
  0x40   :  { %2130 = vmatprep.subr.mxu0 %v2503_v2 }
  0x41   :  { %2131 = vmatpush3.msra.mxu0 %v2612_v26 }
  0x42   :  { %2133 = vmatmul.mubr.f32.vlgmr.msra.gmra.mxu0 %v2503_v2  ;;  %2142 = vmatprep.subr.mxu0 %v2503_v2 }
  0x43   :  { %2143 = vmatpush3.msra.mxu0 %v2610_v25  ;;  %2146 = vmatprep.mubr.msk.f32.mxu0 %vm2504_vm0, %v2503_v2 }
  0x44   :  { %2144 = vmatprep.subr.mxu0 %v2503_v2 }
  0x45   :  { %2145 = vmatpush3.msra.mxu0 %v2612_v26 }
  0x46   :  { %2156 = vmatprep.subr.mxu0 %v2503_v2 }
  0xb4   :  { %v108_v5 = vpop.permute.xlu0 %107 }
  0xb5   :  { %v116_v7 = vmul.f32 %v2591_v6, %v108_v5 }
  0xb7   :  { %v117_v9 = vadd.f32 %v2597_v8, %v116_v7 }
  0xfb   :  { %v230_v10 = vpop.f32.mrf.mxu0 }
  0xfc   :  { %v234_v11 = vadd.f32 %v230_v10, %v117_v9 }
  0xfd   :  { %v2120_v12 = vpop.f32.mrf.mxu0 }
  0xfe   :  { %2262 = vtanh.f32 %v234_v11  ;;  %v2033_v14 = vmul.f32 -1.442695, %v234_v11 }
 0x100   :  { %2264 = vpow2.f32 %v2033_v14 }
 0x102   :  { %v474_v39 = vpop.f32.mrf.mxu0 }
 0x104   :  { %v2134_v40 = vpop.f32.mrf.mxu0 }
 0x10b   :  { %v2263_v13 = vpop.eup %2262 }
 0x10c   :  { %244 = vrot.lane.b32.xlu0 %v2263_v13, %s2506_s19 }
 0x10d   :  { %v2265_v15 = vpop.eup %2264 }
 0x10e   :  { %v238_v16 = vadd.f32 1.0, %v2265_v15 }
 0x110   :  { %2266 = vrcp.f32 %v238_v16  ;;  %264 = vrot.lane.b32.xlu0 %v2034_v20, %s2507_s22 }
 0x11d   :  { %v2267_v17 = vpop.eup %2266 }
 0x11e   :  { %v242_v21 = vmul.f32 0.0, %v2267_v17 }
 0x17e   :  { %v245_v18 = vpop.permute.xlu0 %244 }
 0x17f   :  { %v247_v19 = vmul.f32 %v2267_v17, %v245_v18 }
 0x181   :  { %249 = vrot.lane.b32.xlu1 %v247_v19, %s2496_s24 }
 0x182   :  { %v2623_v28 = vpop.permute.xlu0 %264 }
 0x1f3   :  { %v250_v22 = vpop.permute.xlu1 %249 }
 0x1f4   :  { %v2606_v23 = vadd.f32 %v250_v22, %v242_v21 }
 0x1f6   :  { %2268 = vtanh.f32 %v2606_v23 }
 0x203   :  { %v2269_v24 = vpop.eup %2268 }
 0x204   :  { %255 = vrot.lane.b32.xlu1 %v2269_v24, %s2508_s23 }
 0x276   :  { %v256_v27 = vpop.permute.xlu1 %255 }
 0x277   :  { %v258_v29 = vmul.f32 %v2267_v17, %v256_v27 }
 0x279   :  { %292 = vrot.lane.b32.xlu1 %v258_v29, %s2509_s25  ;;  %v267_v30 = vmul.f32 %v2623_v28, %v258_v29  ;;  %v2511_v29 = vmov 2  }
 0x27b   :  { %269 = vrot.lane.b32.xlu0 %v267_v30, %s2509_s25 }
 0x2eb   :  { %v293_v31 = vpop.permute.xlu1 %292 }
 0x2ec   :  { %2126 = vmatmul.mubr.msk.f32.vlgmr.msra.gmra.mxu1 %vm160_vm1, %v293_v31 }
 0x2ed   :  { %v270_v32 = vpop.permute.xlu0 %269  ;;  %2136 = vmatpush3.msra.mxu1 %v2567_v0  ;;  %2139 = vmatprep.mubr.msk.f32.mxu1 %vm2504_vm0, %v2503_v2 }
 0x2ee   :  { %v272_v33 = vsel %vm160_vm1, %v270_v32, 0.0  ;;  %2137 = vmatprep.subr.mxu1 %v2503_v2 }
 0x2ef   :  { %273 = vadd.xlane.f32.xlu1 %v272_v33  ;;  %2138 = vmatpush3.msra.mxu1 %v2572_v3 }
 0x2f0   :  { %2149 = vmatprep.subr.mxu1 %v2503_v2 }
 0x378   :  { %v274_v36 = vpop.xlane.xlu1 %273 }
 0x379   :  { %v276_v37 = vadd.f32 %v2638_v35, %v274_v36 }
 0x37b   :  { %v2642_v38 = vadd.f32 %v276_v37, %v2569_v1 }
 0x37d   :  { %280 = vperm.xlu0 %2249, %v2642_v38  }
 0x381   :  { %2250 = vset.pattern.permute.xlu0 %v2510_v34 }
 0x382   :  { %119 = vperm.xlu0 %2250, %v2569_v1  }
 0x386   :  { %2253 = vset.pattern.permute.xlu0 %v2511_v29 }
 0x3ac   :  { %v362_v41 = vpop.f32.mrf.mxu1 }
 0x3ae   :  { %v2127_v42 = vpop.f32.mrf.mxu1 }
 0x3f8   :  { %v281_v44 = vpop.permute.xlu0 %280 }
 0x3f9   :  { %v289_v46 = vmul.f32 %v2646_v43, %v281_v44 }
 0x3fb   :  { %v290_v47 = vadd.f32 %v2651_v45, %v289_v46 }
 0x3fd   :  { %v478_v48 = vadd.f32 %v474_v39, %v290_v47  ;;  %v120_v49 = vpop.permute.xlu0 %119 }
 0x3fe   :  { %v122_v50 = vmul.f32 %v2591_v6, %v120_v49 }
 0x3ff   :  { %2270 = vtanh.f32 %v478_v48  ;;  %v2038_v55 = vmul.f32 -1.442695, %v478_v48 }
 0x400   :  { %v123_v51 = vadd.f32 %v2597_v8, %v122_v50 }
 0x402   :  { %v366_v52 = vadd.f32 %v362_v41, %v123_v51 }
 0x404   :  { %2272 = vtanh.f32 %v366_v52  ;;  %v2037_v56 = vmul.f32 -1.442695, %v366_v52 }
 0x405   :  { %2274 = vpow2.f32 %v2038_v55 }
 0x406   :  { %2276 = vpow2.f32 %v2037_v56 }
 0x40c   :  { %v2271_v53 = vpop.eup %2270 }
 0x40d   :  { %488 = vrot.lane.b32.xlu0 %v2271_v53, %s2506_s19 }
 0x411   :  { %v2273_v54 = vpop.eup %2272 }
 0x412   :  { %376 = vrot.lane.b32.xlu0 %v2273_v54, %s2506_s19  ;;  %v2275_v57 = vpop.eup %2274 }
 0x413   :  { %v482_v58 = vadd.f32 1.0, %v2275_v57  ;;  %v2277_v59 = vpop.eup %2276 }
 0x414   :  { %v370_v60 = vadd.f32 1.0, %v2277_v59 }
 0x415   :  { %2278 = vrcp.f32 %v482_v58 }
 0x416   :  { %2280 = vrcp.f32 %v370_v60 }
 0x422   :  { %v2279_v61 = vpop.eup %2278 }
 0x423   :  { %v2281_v4 = vpop.eup %2280  ;;  %v486_v9 = vmul.f32 0.0, %v2279_v61 }
 0x424   :  { %v374_v12 = vmul.f32 %v2281_v4, %v2606_v23 }
 0x47f   :  { %v489_v62 = vpop.permute.xlu0 %488 }
 0x480   :  { %v491_v63 = vmul.f32 %v2279_v61, %v489_v62 }
 0x482   :  { %493 = vrot.lane.b32.xlu0 %v491_v63, %s2496_s24 }
 0x484   :  { %v377_v5 = vpop.permute.xlu0 %376 }
 0x485   :  { %v379_v7 = vmul.f32 %v2281_v4, %v377_v5 }
 0x487   :  { %381 = vrot.lane.b32.xlu0 %v379_v7, %s2496_s24 }
 0x4f4   :  { %v494_v10 = vpop.permute.xlu0 %493 }
 0x4f5   :  { %v2661_v11 = vadd.f32 %v494_v10, %v486_v9 }
 0x4f7   :  { %2282 = vtanh.f32 %v2661_v11 }
 0x4f9   :  { %v382_v13 = vpop.permute.xlu0 %381 }
 0x4fa   :  { %v2665_v14 = vadd.f32 %v382_v13, %v374_v12 }
 0x4fc   :  { %2284 = vtanh.f32 %v2665_v14 }
 0x504   :  { %v2283_v15 = vpop.eup %2282 }
 0x505   :  { %499 = vrot.lane.b32.xlu0 %v2283_v15, %s2508_s23 }
 0x509   :  { %v2285_v16 = vpop.eup %2284 }
 0x50a   :  { %387 = vrot.lane.b32.xlu0 %v2285_v16, %s2508_s23 }
 0x577   :  { %v500_v17 = vpop.permute.xlu0 %499 }
 0x578   :  { %v2670_v18 = vmul.f32 %v2279_v61, %v500_v17 }
 0x57a   :  { %621 = vrot.lane.b32.xlu1 %v2670_v18, %s2509_s25 }
 0x57c   :  { %v388_v19 = vpop.permute.xlu0 %387 }
 0x57d   :  { %v390_v20 = vmul.f32 %v2281_v4, %v388_v19 }
 0x57f   :  { %504 = vrot.lane.b32.xlu0 %v390_v20, %s2509_s25  ;;  %v391_v21 = vmul.f32 %v390_v20, %v2623_v28 }
 0x583   :  { %393 = vrot.lane.b32.xlu0 %v391_v21, %s2509_s25 }
 0x5ec   :  { %v622_v22 = vpop.permute.xlu1 %621 }
 0x5ed   :  { %2147 = vmatmul.mubr.msk.f32.vlgmr.msra.gmra.mxu0 %vm160_vm1, %v622_v22 }
 0x5ee   :  { %2157 = vmatpush3.msra.mxu0 %v2610_v25  ;;  %2160 = vmatprep.mubr.msk.f32.mxu0 %vm2504_vm0, %v2503_v2 }
 0x5ef   :  { %2158 = vmatprep.subr.mxu0 %v2503_v2 }
 0x5f0   :  { %2159 = vmatpush3.msra.mxu0 %v2612_v26 }
 0x5f1   :  { %v505_v23 = vpop.permute.xlu0 %504  ;;  %2170 = vmatprep.subr.mxu0 %v2503_v2 }
 0x5f2   :  { %2140 = vmatmul.mubr.msk.f32.vlgmr.msra.gmra.mxu1 %vm160_vm1, %v505_v23 }
 0x5f3   :  { %2150 = vmatpush3.msra.mxu1 %v2567_v0  ;;  %2153 = vmatprep.mubr.msk.f32.mxu1 %vm2504_vm0, %v2503_v2 }
 0x5f4   :  { %2151 = vmatprep.subr.mxu1 %v2503_v2 }
 0x5f5   :  { %v394_v24 = vpop.permute.xlu0 %393  ;;  %2152 = vmatpush3.msra.mxu1 %v2572_v3 }
 0x5f6   :  { %v396_v27 = vsel %vm160_vm1, %v394_v24, 0.0  ;;  %2163 = vmatprep.subr.mxu1 %v2503_v2 }
 0x5f7   :  { %397 = vadd.xlane.f32.xlu0 %v396_v27 }
 0x680   :  { %v398_v30 = vpop.xlane.xlu0 %397 }
 0x681   :  { %v399_v31 = vadd.f32 %v398_v30, %v2638_v35 }
 0x683   :  { %v2694_v32 = vadd.f32 %v399_v31, %v2569_v1 }
 0x685   :  { %403 = vperm.xlu1 %2251, %v2694_v32  }
 0x689   :  { %2252 = vset.pattern.permute.xlu1 %v2511_v29  ;;  %v2512_v29 = vmov 3  }
 0x68a   :  { %125 = vperm.xlu1 %2252, %v2569_v1  }
 0x6ad   :  { %v691_v33 = vpop.f32.mrf.mxu0 }
 0x6af   :  { %v2148_v34 = vpop.f32.mrf.mxu0 }
 0x6b2   :  { %v574_v36 = vpop.f32.mrf.mxu1 }
 0x6b4   :  { %v2141_v37 = vpop.f32.mrf.mxu1 }
 0x700   :  { %v404_v39 = vpop.permute.xlu1 %403 }
 0x701   :  { %v406_v40 = vmul.f32 %v2646_v43, %v404_v39 }
 0x703   :  { %v407_v41 = vadd.f32 %v2651_v45, %v406_v40 }
 0x705   :  { %v695_v42 = vadd.f32 %v691_v33, %v407_v41  ;;  %v126_v44 = vpop.permute.xlu1 %125 }
 0x706   :  { %v128_v46 = vmul.f32 %v2591_v6, %v126_v44 }
 0x707   :  { %2286 = vtanh.f32 %v695_v42  ;;  %v2042_v51 = vmul.f32 -1.442695, %v695_v42 }
 0x708   :  { %v129_v47 = vadd.f32 %v2597_v8, %v128_v46 }
 0x70a   :  { %v578_v48 = vadd.f32 %v574_v36, %v129_v47 }
 0x70c   :  { %2288 = vtanh.f32 %v578_v48  ;;  %v2040_v52 = vmul.f32 -1.442695, %v578_v48 }
 0x70d   :  { %2290 = vpow2.f32 %v2042_v51 }
 0x70e   :  { %2292 = vpow2.f32 %v2040_v52 }
 0x714   :  { %v2287_v49 = vpop.eup %2286 }
 0x715   :  { %705 = vrot.lane.b32.xlu1 %v2287_v49, %s2506_s19 }
 0x719   :  { %v2289_v50 = vpop.eup %2288 }
 0x71a   :  { %588 = vrot.lane.b32.xlu1 %v2289_v50, %s2506_s19  ;;  %v2291_v53 = vpop.eup %2290 }
 0x71b   :  { %v699_v54 = vadd.f32 1.0, %v2291_v53  ;;  %v2293_v55 = vpop.eup %2292 }
 0x71c   :  { %v582_v56 = vadd.f32 1.0, %v2293_v55 }
 0x71d   :  { %2294 = vrcp.f32 %v699_v54 }
 0x71e   :  { %2296 = vrcp.f32 %v582_v56 }
 0x72a   :  { %v2295_v57 = vpop.eup %2294 }
 0x72b   :  { %v2297_v60 = vpop.eup %2296  ;;  %v703_v63 = vmul.f32 %v2295_v57, %v2661_v11 }
 0x72c   :  { %v586_v7 = vmul.f32 %v2297_v60, %v2665_v14 }
 0x787   :  { %v706_v58 = vpop.permute.xlu1 %705 }
 0x788   :  { %v708_v59 = vmul.f32 %v2295_v57, %v706_v58 }
 0x78a   :  { %710 = vrot.lane.b32.xlu1 %v708_v59, %s2496_s24 }
 0x78c   :  { %v589_v61 = vpop.permute.xlu1 %588 }
 0x78d   :  { %v591_v62 = vmul.f32 %v2297_v60, %v589_v61 }
 0x78f   :  { %593 = vrot.lane.b32.xlu1 %v591_v62, %s2496_s24 }
 0x7fc   :  { %v711_v4 = vpop.permute.xlu1 %710 }
 0x7fd   :  { %v2707_v5 = vadd.f32 %v711_v4, %v703_v63 }
 0x7ff   :  { %2298 = vtanh.f32 %v2707_v5 }
 0x801   :  { %v594_v9 = vpop.permute.xlu1 %593 }
 0x802   :  { %v2711_v10 = vadd.f32 %v594_v9, %v586_v7 }
 0x804   :  { %2300 = vtanh.f32 %v2711_v10 }
 0x80c   :  { %v2299_v12 = vpop.eup %2298 }
 0x80d   :  { %716 = vrot.lane.b32.xlu1 %v2299_v12, %s2508_s23 }
 0x811   :  { %v2301_v13 = vpop.eup %2300 }
 0x812   :  { %599 = vrot.lane.b32.xlu0 %v2301_v13, %s2508_s23 }
 0x87f   :  { %v717_v15 = vpop.permute.xlu1 %716 }
 0x880   :  { %v2716_v11 = vmul.f32 %v2295_v57, %v717_v15 }
 0x882   :  { %838 = vrot.lane.b32.xlu1 %v2716_v11, %s2509_s25 }
 0x884   :  { %v600_v16 = vpop.permute.xlu0 %599 }
 0x885   :  { %v602_v17 = vmul.f32 %v2297_v60, %v600_v16 }
 0x887   :  { %721 = vrot.lane.b32.xlu1 %v602_v17, %s2509_s25  ;;  %v603_v14 = vmul.f32 %v602_v17, %v2623_v28 }
 0x88b   :  { %605 = vrot.lane.b32.xlu1 %v603_v14, %s2509_s25 }
 0x8f4   :  { %v839_v19 = vpop.permute.xlu1 %838 }
 0x8f5   :  { %2161 = vmatmul.mubr.msk.f32.vlgmr.msra.gmra.mxu0 %vm160_vm1, %v839_v19 }
 0x8f6   :  { %2171 = vmatpush3.msra.mxu0 %v2610_v25  ;;  %2174 = vmatprep.mubr.msk.f32.mxu0 %vm2504_vm0, %v2503_v2 }
 0x8f7   :  { %2172 = vmatprep.subr.mxu0 %v2503_v2 }
 0x8f8   :  { %2173 = vmatpush3.msra.mxu0 %v2612_v26 }
 0x8f9   :  { %v722_v20 = vpop.permute.xlu1 %721  ;;  %2184 = vmatprep.subr.mxu0 %v2503_v2 }
 0x8fa   :  { %2154 = vmatmul.mubr.msk.f32.vlgmr.msra.gmra.mxu1 %vm160_vm1, %v722_v20 }
 0x8fb   :  { %2164 = vmatpush3.msra.mxu1 %v2567_v0  ;;  %2167 = vmatprep.mubr.msk.f32.mxu1 %vm2504_vm0, %v2503_v2 }
 0x8fc   :  { %2165 = vmatprep.subr.mxu1 %v2503_v2 }
 0x8fd   :  { %v606_v21 = vpop.permute.xlu1 %605  ;;  %2166 = vmatpush3.msra.mxu1 %v2572_v3 }
 0x8fe   :  { %v608_v22 = vsel %vm160_vm1, %v606_v21, 0.0  ;;  %2177 = vmatprep.subr.mxu1 %v2503_v2 }
 0x8ff   :  { %609 = vadd.xlane.f32.xlu1 %v608_v22  ;;  %v2513_v22 = vmov 4  }
 0x900   :  { %2256 = vset.pattern.permute.xlu1 %v2513_v22 }
 0x988   :  { %v610_v23 = vpop.xlane.xlu1 %609 }
 0x989   :  { %v611_v24 = vadd.f32 %v610_v23, %v2638_v35 }
 0x98b   :  { %v2740_v27 = vadd.f32 %v611_v24, %v2569_v1 }
 0x98d   :  { %615 = vperm.xlu0 %2253, %v2740_v27  }
 0x991   :  { %2254 = vset.pattern.permute.xlu0 %v2512_v29 }
 0x992   :  { %131 = vperm.xlu0 %2254, %v2569_v1  }
 0x9b5   :  { %v908_v30 = vpop.f32.mrf.mxu0 }
 0x9b7   :  { %v2162_v31 = vpop.f32.mrf.mxu0 }
 0x9ba   :  { %v791_v33 = vpop.f32.mrf.mxu1 }
 0x9bc   :  { %v2155_v34 = vpop.f32.mrf.mxu1 }
 0xa08   :  { %v616_v36 = vpop.permute.xlu0 %615 }
 0xa09   :  { %v618_v37 = vmul.f32 %v2646_v43, %v616_v36 }
 0xa0b   :  { %v619_v39 = vadd.f32 %v2651_v45, %v618_v37 }
 0xa0d   :  { %v912_v40 = vadd.f32 %v908_v30, %v619_v39  ;;  %v132_v41 = vpop.permute.xlu0 %131 }
 0xa0e   :  { %v134_v42 = vmul.f32 %v2591_v6, %v132_v41 }
 0xa0f   :  { %2302 = vtanh.f32 %v912_v40  ;;  %v2046_v49 = vmul.f32 -1.442695, %v912_v40 }
 0xa10   :  { %v135_v44 = vadd.f32 %v2597_v8, %v134_v42 }
 0xa12   :  { %v795_v46 = vadd.f32 %v791_v33, %v135_v44 }
 0xa14   :  { %2304 = vtanh.f32 %v795_v46  ;;  %v2044_v50 = vmul.f32 -1.442695, %v795_v46 }
 0xa15   :  { %2306 = vpow2.f32 %v2046_v49 }
 0xa16   :  { %2308 = vpow2.f32 %v2044_v50 }
 0xa1c   :  { %v2303_v47 = vpop.eup %2302 }
 0xa1d   :  { %922 = vrot.lane.b32.xlu0 %v2303_v47, %s2506_s19 }
 0xa21   :  { %v2305_v48 = vpop.eup %2304 }
 0xa22   :  { %805 = vrot.lane.b32.xlu0 %v2305_v48, %s2506_s19  ;;  %v2307_v51 = vpop.eup %2306 }
 0xa23   :  { %v916_v52 = vadd.f32 1.0, %v2307_v51  ;;  %v2309_v53 = vpop.eup %2308 }
 0xa24   :  { %v799_v54 = vadd.f32 1.0, %v2309_v53 }
 0xa25   :  { %2310 = vrcp.f32 %v916_v52 }
 0xa26   :  { %2312 = vrcp.f32 %v799_v54 }
 0xa32   :  { %v2311_v55 = vpop.eup %2310 }
 0xa33   :  { %v2313_v58 = vpop.eup %2312  ;;  %v920_v61 = vmul.f32 %v2311_v55, %v2707_v5 }
 0xa34   :  { %v803_v4 = vmul.f32 %v2313_v58, %v2711_v10 }
 0xa8f   :  { %v923_v56 = vpop.permute.xlu0 %922 }
 0xa90   :  { %v925_v57 = vmul.f32 %v2311_v55, %v923_v56 }
 0xa92   :  { %927 = vrot.lane.b32.xlu0 %v925_v57, %s2496_s24 }
 0xa94   :  { %v806_v59 = vpop.permute.xlu0 %805 }
 0xa95   :  { %v808_v60 = vmul.f32 %v2313_v58, %v806_v59 }
 0xa97   :  { %810 = vrot.lane.b32.xlu0 %v808_v60, %s2496_s24 }
 0xb04   :  { %v928_v62 = vpop.permute.xlu0 %927 }
 0xb05   :  { %v2753_v63 = vadd.f32 %v928_v62, %v920_v61 }
 0xb07   :  { %2314 = vtanh.f32 %v2753_v63 }
 0xb09   :  { %v811_v7 = vpop.permute.xlu0 %810 }
 0xb0a   :  { %v2757_v9 = vadd.f32 %v811_v7, %v803_v4 }
 0xb0c   :  { %2316 = vtanh.f32 %v2757_v9 }
 0xb14   :  { %v2315_v12 = vpop.eup %2314 }
 0xb15   :  { %933 = vrot.lane.b32.xlu1 %v2315_v12, %s2508_s23 }
 0xb19   :  { %v2317_v13 = vpop.eup %2316 }
 0xb1a   :  { %816 = vrot.lane.b32.xlu0 %v2317_v13, %s2508_s23 }
 0xb87   :  { %v934_v15 = vpop.permute.xlu1 %933 }
 0xb88   :  { %v2762_v5 = vmul.f32 %v2311_v55, %v934_v15 }
 0xb8a   :  { %1055 = vrot.lane.b32.xlu0 %v2762_v5, %s2509_s25 }
 0xb8c   :  { %v817_v16 = vpop.permute.xlu0 %816 }
 0xb8d   :  { %v819_v17 = vmul.f32 %v2313_v58, %v817_v16 }
 0xb8f   :  { %938 = vrot.lane.b32.xlu0 %v819_v17, %s2509_s25  ;;  %v820_v10 = vmul.f32 %v819_v17, %v2623_v28 }
 0xb93   :  { %822 = vrot.lane.b32.xlu0 %v820_v10, %s2509_s25 }
 0xbfc   :  { %v1056_v14 = vpop.permute.xlu0 %1055 }
 0xbfd   :  { %2175 = vmatmul.mubr.msk.f32.vlgmr.msra.gmra.mxu0 %vm160_vm1, %v1056_v14 }
 0xbfe   :  { %2185 = vmatpush3.msra.mxu0 %v2610_v25  ;;  %2188 = vmatprep.mubr.msk.f32.mxu0 %vm2504_vm0, %v2503_v2 }
 0xbff   :  { %2186 = vmatprep.subr.mxu0 %v2503_v2 }
 0xc00   :  { %2187 = vmatpush3.msra.mxu0 %v2612_v26 }
 0xc01   :  { %v939_v19 = vpop.permute.xlu0 %938  ;;  %2198 = vmatprep.subr.mxu0 %v2503_v2 }
 0xc02   :  { %2168 = vmatmul.mubr.msk.f32.vlgmr.msra.gmra.mxu1 %vm160_vm1, %v939_v19 }
 0xc03   :  { %2178 = vmatpush3.msra.mxu1 %v2567_v0  ;;  %2181 = vmatprep.mubr.msk.f32.mxu1 %vm2504_vm0, %v2503_v2 }
 0xc04   :  { %2179 = vmatprep.subr.mxu1 %v2503_v2 }
 0xc05   :  { %v823_v20 = vpop.permute.xlu0 %822  ;;  %2180 = vmatpush3.msra.mxu1 %v2572_v3 }
 0xc06   :  { %v825_v21 = vsel %vm160_vm1, %v823_v20, 0.0  ;;  %2191 = vmatprep.subr.mxu1 %v2503_v2 }
 0xc07   :  { %826 = vadd.xlane.f32.xlu1 %v825_v21 }
 0xc90   :  { %v827_v23 = vpop.xlane.xlu1 %826 }
 0xc91   :  { %v828_v24 = vadd.f32 %v827_v23, %v2638_v35  ;;  %v2514_v23 = vmov 5  }
 0xc93   :  { %v2786_v29 = vadd.f32 %v828_v24, %v2569_v1 }
 0xc95   :  { %832 = vperm.xlu0 %2254, %v2786_v29  }
 0xc99   :  { %2255 = vset.pattern.permute.xlu0 %v2513_v22 }
 0xc9a   :  { %137 = vperm.xlu0 %2255, %v2569_v1  }
 0xc9e   :  { %2258 = vset.pattern.permute.xlu0 %v2514_v23 }
 0xcbd   :  { %v1125_v30 = vpop.f32.mrf.mxu0 }
 0xcbf   :  { %v2176_v31 = vpop.f32.mrf.mxu0 }
 0xcc2   :  { %v1008_v33 = vpop.f32.mrf.mxu1 }
 0xcc4   :  { %v2169_v34 = vpop.f32.mrf.mxu1 }
 0xd10   :  { %v833_v36 = vpop.permute.xlu0 %832 }
 0xd11   :  { %v835_v37 = vmul.f32 %v2646_v43, %v833_v36 }
 0xd13   :  { %v836_v39 = vadd.f32 %v2651_v45, %v835_v37 }
 0xd15   :  { %v1129_v40 = vadd.f32 %v1125_v30, %v836_v39  ;;  %v138_v41 = vpop.permute.xlu0 %137 }
 0xd16   :  { %v140_v42 = vmul.f32 %v2591_v6, %v138_v41 }
 0xd17   :  { %2318 = vtanh.f32 %v1129_v40  ;;  %v2050_v49 = vmul.f32 -1.442695, %v1129_v40 }
 0xd18   :  { %v141_v44 = vadd.f32 %v2597_v8, %v140_v42 }
 0xd1a   :  { %v1012_v46 = vadd.f32 %v1008_v33, %v141_v44 }
 0xd1c   :  { %2320 = vtanh.f32 %v1012_v46  ;;  %v2048_v50 = vmul.f32 -1.442695, %v1012_v46 }
 0xd1d   :  { %2322 = vpow2.f32 %v2050_v49 }
 0xd1e   :  { %2324 = vpow2.f32 %v2048_v50 }
 0xd24   :  { %v2319_v47 = vpop.eup %2318 }
 0xd25   :  { %1139 = vrot.lane.b32.xlu0 %v2319_v47, %s2506_s19 }
 0xd29   :  { %v2321_v48 = vpop.eup %2320 }
 0xd2a   :  { %1022 = vrot.lane.b32.xlu0 %v2321_v48, %s2506_s19  ;;  %v2323_v51 = vpop.eup %2322 }
 0xd2b   :  { %v1133_v52 = vadd.f32 1.0, %v2323_v51  ;;  %v2325_v53 = vpop.eup %2324 }
 0xd2c   :  { %v1016_v54 = vadd.f32 1.0, %v2325_v53 }
 0xd2d   :  { %2326 = vrcp.f32 %v1133_v52 }
 0xd2e   :  { %2328 = vrcp.f32 %v1016_v54 }
 0xd3a   :  { %v2327_v55 = vpop.eup %2326 }
 0xd3b   :  { %v2329_v58 = vpop.eup %2328  ;;  %v1137_v61 = vmul.f32 %v2327_v55, %v2753_v63 }
 0xd3c   :  { %v1020_v7 = vmul.f32 %v2329_v58, %v2757_v9 }
 0xd97   :  { %v1140_v56 = vpop.permute.xlu0 %1139 }
 0xd98   :  { %v1142_v57 = vmul.f32 %v2327_v55, %v1140_v56 }
 0xd9a   :  { %1144 = vrot.lane.b32.xlu0 %v1142_v57, %s2496_s24 }
 0xd9c   :  { %v1023_v59 = vpop.permute.xlu0 %1022 }
 0xd9d   :  { %v1025_v60 = vmul.f32 %v2329_v58, %v1023_v59 }
 0xd9f   :  { %1027 = vrot.lane.b32.xlu0 %v1025_v60, %s2496_s24 }
 0xe0c   :  { %v1145_v62 = vpop.permute.xlu0 %1144 }
 0xe0d   :  { %v2799_v4 = vadd.f32 %v1145_v62, %v1137_v61 }
 0xe0f   :  { %2330 = vtanh.f32 %v2799_v4 }
 0xe11   :  { %v1028_v12 = vpop.permute.xlu0 %1027 }
 0xe12   :  { %v2803_v13 = vadd.f32 %v1028_v12, %v1020_v7 }
 0xe14   :  { %2332 = vtanh.f32 %v2803_v13 }
 0xe1c   :  { %v2331_v15 = vpop.eup %2330 }
 0xe1d   :  { %1150 = vrot.lane.b32.xlu0 %v2331_v15, %s2508_s23 }
 0xe21   :  { %v2333_v16 = vpop.eup %2332 }
 0xe22   :  { %1033 = vrot.lane.b32.xlu0 %v2333_v16, %s2508_s23 }
 0xe8f   :  { %v1151_v17 = vpop.permute.xlu0 %1150 }
 0xe90   :  { %v2808_v63 = vmul.f32 %v2327_v55, %v1151_v17 }
 0xe92   :  { %1272 = vrot.lane.b32.xlu1 %v2808_v63, %s2509_s25 }
 0xe94   :  { %v1034_v10 = vpop.permute.xlu0 %1033 }
 0xe95   :  { %v1036_v14 = vmul.f32 %v2329_v58, %v1034_v10 }
 0xe97   :  { %1155 = vrot.lane.b32.xlu0 %v1036_v14, %s2509_s25  ;;  %v1037_v9 = vmul.f32 %v1036_v14, %v2623_v28 }
 0xe9b   :  { %1039 = vrot.lane.b32.xlu0 %v1037_v9, %s2509_s25 }
 0xf04   :  { %v1273_v19 = vpop.permute.xlu1 %1272 }
 0xf05   :  { %2189 = vmatmul.mubr.msk.f32.vlgmr.msra.gmra.mxu0 %vm160_vm1, %v1273_v19 }
 0xf06   :  { %2199 = vmatpush3.msra.mxu0 %v2610_v25  ;;  %2202 = vmatprep.mubr.msk.f32.mxu0 %vm2504_vm0, %v2503_v2 }
 0xf07   :  { %2200 = vmatprep.subr.mxu0 %v2503_v2 }
 0xf08   :  { %2201 = vmatpush3.msra.mxu0 %v2612_v26 }
 0xf09   :  { %v1156_v20 = vpop.permute.xlu0 %1155  ;;  %2212 = vmatprep.subr.mxu0 %v2503_v2 }
 0xf0a   :  { %2182 = vmatmul.mubr.msk.f32.vlgmr.msra.gmra.mxu1 %vm160_vm1, %v1156_v20 }
 0xf0b   :  { %2192 = vmatpush3.msra.mxu1 %v2567_v0  ;;  %2195 = vmatprep.mubr.msk.f32.mxu1 %vm2504_vm0, %v2503_v2 }
 0xf0c   :  { %2193 = vmatprep.subr.mxu1 %v2503_v2 }
 0xf0d   :  { %v1040_v21 = vpop.permute.xlu0 %1039  ;;  %2194 = vmatpush3.msra.mxu1 %v2572_v3 }
 0xf0e   :  { %v1042_v22 = vsel %vm160_vm1, %v1040_v21, 0.0  ;;  %2205 = vmatprep.subr.mxu1 %v2503_v2 }
 0xf0f   :  { %1043 = vadd.xlane.f32.xlu0 %v1042_v22 }
 0xf98   :  { %v1044_v24 = vpop.xlane.xlu0 %1043 }
 0xf99   :  { %v1045_v30 = vadd.f32 %v1044_v24, %v2638_v35 }
 0xf9b   :  { %v2832_v31 = vadd.f32 %v1045_v30, %v2569_v1 }
 0xf9d   :  { %1049 = vperm.xlu1 %2256, %v2832_v31  }
 0xfa1   :  { %2257 = vset.pattern.permute.xlu1 %v2514_v23 }
 0xfa2   :  { %143 = vperm.xlu1 %2257, %v2569_v1  }
 0xfc5   :  { %v1342_v33 = vpop.f32.mrf.mxu0 }
 0xfc7   :  { %v2190_v34 = vpop.f32.mrf.mxu0 }
 0xfca   :  { %v1225_v36 = vpop.f32.mrf.mxu1 }
 0xfcc   :  { %v2183_v37 = vpop.f32.mrf.mxu1 }
0x1018   :  { %v1050_v39 = vpop.permute.xlu1 %1049 }
0x1019   :  { %v1052_v40 = vmul.f32 %v2646_v43, %v1050_v39 }
0x101b   :  { %v1053_v41 = vadd.f32 %v2651_v45, %v1052_v40 }
0x101d   :  { %v1346_v42 = vadd.f32 %v1342_v33, %v1053_v41  ;;  %v144_v44 = vpop.permute.xlu1 %143 }
0x101e   :  { %v146_v46 = vmul.f32 %v2591_v6, %v144_v44 }
0x101f   :  { %2334 = vtanh.f32 %v1346_v42  ;;  %v2054_v51 = vmul.f32 -1.442695, %v1346_v42 }
0x1020   :  { %v147_v47 = vadd.f32 %v2597_v8, %v146_v46 }
0x1022   :  { %v1229_v48 = vadd.f32 %v1225_v36, %v147_v47 }
0x1024   :  { %2336 = vtanh.f32 %v1229_v48  ;;  %v2052_v52 = vmul.f32 -1.442695, %v1229_v48 }
0x1025   :  { %2338 = vpow2.f32 %v2054_v51 }
0x1026   :  { %2340 = vpow2.f32 %v2052_v52 }
0x102c   :  { %v2335_v49 = vpop.eup %2334 }
0x102d   :  { %1356 = vrot.lane.b32.xlu1 %v2335_v49, %s2506_s19 }
0x1031   :  { %v2337_v50 = vpop.eup %2336 }
0x1032   :  { %1239 = vrot.lane.b32.xlu1 %v2337_v50, %s2506_s19  ;;  %v2339_v53 = vpop.eup %2338 }
0x1033   :  { %v1350_v54 = vadd.f32 1.0, %v2339_v53  ;;  %v2341_v55 = vpop.eup %2340 }
0x1034   :  { %v1233_v56 = vadd.f32 1.0, %v2341_v55 }
0x1035   :  { %2342 = vrcp.f32 %v1350_v54 }
0x1036   :  { %2344 = vrcp.f32 %v1233_v56 }
0x1042   :  { %v2343_v57 = vpop.eup %2342 }
0x1043   :  { %v2345_v60 = vpop.eup %2344  ;;  %v1354_v7 = vmul.f32 %v2343_v57, %v2799_v4 }
0x1044   :  { %v1237_v16 = vmul.f32 %v2345_v60, %v2803_v13 }
0x109f   :  { %v1357_v58 = vpop.permute.xlu1 %1356 }
0x10a0   :  { %v1359_v59 = vmul.f32 %v2343_v57, %v1357_v58 }
0x10a2   :  { %1361 = vrot.lane.b32.xlu1 %v1359_v59, %s2496_s24 }
0x10a4   :  { %v1240_v61 = vpop.permute.xlu1 %1239 }
0x10a5   :  { %v1242_v62 = vmul.f32 %v2345_v60, %v1240_v61 }
0x10a7   :  { %1244 = vrot.lane.b32.xlu1 %v1242_v62, %s2496_s24 }
0x1114   :  { %v1362_v12 = vpop.permute.xlu1 %1361 }
0x1115   :  { %v2845_v15 = vadd.f32 %v1362_v12, %v1354_v7 }
0x1117   :  { %2346 = vtanh.f32 %v2845_v15 }
0x1119   :  { %v1245_v17 = vpop.permute.xlu1 %1244 }
0x111a   :  { %v2849_v10 = vadd.f32 %v1245_v17, %v1237_v16 }
0x111c   :  { %2348 = vtanh.f32 %v2849_v10 }
0x1124   :  { %v2347_v14 = vpop.eup %2346 }
0x1125   :  { %1367 = vrot.lane.b32.xlu1 %v2347_v14, %s2508_s23 }
0x1129   :  { %v2349_v9 = vpop.eup %2348 }
0x112a   :  { %1250 = vrot.lane.b32.xlu0 %v2349_v9, %s2508_s23 }
0x1197   :  { %v1368_v19 = vpop.permute.xlu1 %1367 }
0x1198   :  { %v2854_v4 = vmul.f32 %v2343_v57, %v1368_v19 }
0x119a   :  { %1489 = vrot.lane.b32.xlu1 %v2854_v4, %s2509_s25 }
0x119c   :  { %v1251_v20 = vpop.permute.xlu0 %1250 }
0x119d   :  { %v1253_v21 = vmul.f32 %v2345_v60, %v1251_v20 }
0x119f   :  { %1372 = vrot.lane.b32.xlu1 %v1253_v21, %s2509_s25  ;;  %v1254_v13 = vmul.f32 %v1253_v21, %v2623_v28 }
0x11a3   :  { %1256 = vrot.lane.b32.xlu1 %v1254_v13, %s2509_s25 }
0x120c   :  { %v1490_v22 = vpop.permute.xlu1 %1489 }
0x120d   :  { %2203 = vmatmul.mubr.msk.f32.vlgmr.msra.gmra.mxu0 %vm160_vm1, %v1490_v22 }
0x120e   :  { %2213 = vmatpush3.msra.mxu0 %v2610_v25  ;;  %2216 = vmatprep.mubr.msk.f32.mxu0 %vm2504_vm0, %v2503_v2 }
0x120f   :  { %2214 = vmatprep.subr.mxu0 %v2503_v2 }
0x1210   :  { %2215 = vmatpush3.msra.mxu0 %v2612_v26 }
0x1211   :  { %v1373_v23 = vpop.permute.xlu1 %1372 }
0x1212   :  { %2196 = vmatmul.mubr.msk.f32.vlgmr.msra.gmra.mxu1 %vm160_vm1, %v1373_v23 }
0x1213   :  { %2206 = vmatpush3.msra.mxu1 %v2567_v0  ;;  %2209 = vmatprep.mubr.msk.f32.mxu1 %vm2504_vm0, %v2503_v2  ;;  %v2515_v0 = vmov 6  }
0x1214   :  { %2207 = vmatprep.subr.mxu1 %v2503_v2 }
0x1215   :  { %v1257_v24 = vpop.permute.xlu1 %1256  ;;  %2208 = vmatpush3.msra.mxu1 %v2572_v3 }
0x1216   :  { %v1259_v30 = vsel %vm160_vm1, %v1257_v24, 0.0  ;;  %2219 = vmatprep.subr.mxu1 %v2503_v2 }
0x1217   :  { %1260 = vadd.xlane.f32.xlu1 %v1259_v30 }
0x12a0   :  { %v1261_v33 = vpop.xlane.xlu1 %1260 }
0x12a1   :  { %v1262_v34 = vadd.f32 %v1261_v33, %v2638_v35  ;;  %v2516_v33 = vmov 7  }
0x12a2   :  { %2261 = vset.pattern.permute.xlu1 %v2516_v33 }
0x12a3   :  { %v2877_v36 = vadd.f32 %v1262_v34, %v2569_v1 }
0x12a5   :  { %1266 = vperm.xlu0 %2258, %v2877_v36  }
0x12a9   :  { %2259 = vset.pattern.permute.xlu0 %v2515_v0 }
0x12aa   :  { %149 = vperm.xlu0 %2259, %v2569_v1  }
0x12cd   :  { %v1559_v37 = vpop.f32.mrf.mxu0 }
0x12cf   :  { %v2204_v39 = vpop.f32.mrf.mxu0 }
0x12d2   :  { %v1442_v3 = vpop.f32.mrf.mxu1 }
0x12d4   :  { %v2197_v40 = vpop.f32.mrf.mxu1 }
0x1320   :  { %v1267_v41 = vpop.permute.xlu0 %1266 }
0x1321   :  { %v1269_v42 = vmul.f32 %v2646_v43, %v1267_v41 }
0x1323   :  { %v1270_v44 = vadd.f32 %v2651_v45, %v1269_v42 }
0x1325   :  { %v1563_v46 = vadd.f32 %v1559_v37, %v1270_v44  ;;  %v150_v47 = vpop.permute.xlu0 %149  ;;  %v2915_v37 = vld [vmem:[#allocation2] sm:$0xff] }
0x1326   :  { %v152_v48 = vmul.f32 %v2591_v6, %v150_v47  ;;  %v2391_v47 = vld [vmem:[#allocation6] ss:$0 sm:$0xff] }
0x1327   :  { %2350 = vtanh.f32 %v1563_v46  ;;  %v2058_v52 = vmul.f32 -1.442695, %v1563_v46 }
0x1328   :  { %v153_v49 = vadd.f32 %v2597_v8, %v152_v48 }
0x132a   :  { %v1446_v50 = vadd.f32 %v1442_v3, %v153_v49  ;;  %v2392_v49 = vld [vmem:[%s2991_s3] ss:$0 sm:$0xff] }
0x132c   :  { %2352 = vtanh.f32 %v1446_v50  ;;  %v2056_v53 = vmul.f32 -1.442695, %v1446_v50 }
0x132d   :  { %2354 = vpow2.f32 %v2058_v52 }
0x132e   :  { %2356 = vpow2.f32 %v2056_v53 }
0x1334   :  { %v2351_v51 = vpop.eup %2350 }
0x1335   :  { %1573 = vrot.lane.b32.xlu0 %v2351_v51, %s2506_s19 }
0x1339   :  { %v2353_v1 = vpop.eup %2352 }
0x133a   :  { %1456 = vrot.lane.b32.xlu0 %v2353_v1, %s2506_s19  ;;  %v2355_v54 = vpop.eup %2354 }
0x133b   :  { %v1567_v55 = vadd.f32 1.0, %v2355_v54  ;;  %v2357_v56 = vpop.eup %2356 }
0x133c   :  { %v1450_v6 = vadd.f32 1.0, %v2357_v56 }
0x133d   :  { %2358 = vrcp.f32 %v1567_v55 }
0x133e   :  { %2360 = vrcp.f32 %v1450_v6 }
0x134a   :  { %v2359_v57 = vpop.eup %2358 }
0x134b   :  { %v2361_v59 = vpop.eup %2360  ;;  %v1571_v62 = vmul.f32 %v2359_v57, %v2845_v15 }
0x134c   :  { %v1454_v16 = vmul.f32 %v2361_v59, %v2849_v10 }
0x13a7   :  { %v1574_v8 = vpop.permute.xlu0 %1573 }
0x13a8   :  { %v1576_v58 = vmul.f32 %v2359_v57, %v1574_v8 }
0x13aa   :  { %1578 = vrot.lane.b32.xlu0 %v1576_v58, %s2496_s24 }
0x13ac   :  { %v1457_v60 = vpop.permute.xlu0 %1456 }
0x13ad   :  { %v1459_v61 = vmul.f32 %v2361_v59, %v1457_v60 }
0x13af   :  { %1461 = vrot.lane.b32.xlu0 %v1459_v61, %s2496_s24 }
0x141c   :  { %v1579_v7 = vpop.permute.xlu0 %1578 }
0x141d   :  { %v2890_v12 = vadd.f32 %v1579_v7, %v1571_v62 }
0x141f   :  { %2362 = vtanh.f32 %v2890_v12 }
0x1421   :  { %v1462_v17 = vpop.permute.xlu0 %1461 }
0x1422   :  { %v2894_v14 = vadd.f32 %v1462_v17, %v1454_v16 }
0x1424   :  { %2364 = vtanh.f32 %v2894_v14 }
0x142c   :  { %v2363_v9 = vpop.eup %2362 }
0x142d   :  { %1584 = vrot.lane.b32.xlu1 %v2363_v9, %s2508_s23 }
0x1431   :  { %v2365_v19 = vpop.eup %2364 }
0x1432   :  { %1467 = vrot.lane.b32.xlu0 %v2365_v19, %s2508_s23 }
0x149f   :  { %v1585_v20 = vpop.permute.xlu1 %1584 }
0x14a0   :  { %v2899_v15 = vmul.f32 %v2359_v57, %v1585_v20 }
0x14a2   :  { %1706 = vrot.lane.b32.xlu0 %v2899_v15, %s2509_s25 }
0x14a4   :  { %v1468_v21 = vpop.permute.xlu0 %1467 }
0x14a5   :  { %v1470_v13 = vmul.f32 %v2361_v59, %v1468_v21 }
0x14a7   :  { %1589 = vrot.lane.b32.xlu0 %v1470_v13, %s2509_s25  ;;  %v1471_v10 = vmul.f32 %v1470_v13, %v2623_v28 }
0x14ab   :  { %1473 = vrot.lane.b32.xlu0 %v1471_v10, %s2509_s25 }
0x1514   :  { %v1707_v22 = vpop.permute.xlu0 %1706 }
0x1515   :  { %2217 = vmatmul.mubr.msk.f32.vlgmr.msra.gmra.mxu0 %vm160_vm1, %v1707_v22 }
0x1519   :  { %v1590_v23 = vpop.permute.xlu0 %1589 }
0x151a   :  { %2210 = vmatmul.mubr.msk.f32.vlgmr.msra.gmra.mxu1 %vm160_vm1, %v1590_v23 }
0x151b   :  { %2220 = vmatpush3.msra.mxu1 %v2610_v25  ;;  %2223 = vmatprep.mubr.msk.f32.mxu1 %vm2504_vm0, %v2503_v2 }
0x151c   :  { %2221 = vmatprep.subr.mxu1 %v2503_v2 }
0x151d   :  { %v1474_v24 = vpop.permute.xlu0 %1473  ;;  %2222 = vmatpush3.msra.mxu1 %v2612_v26 }
0x151e   :  { %v1476_v30 = vsel %vm160_vm1, %v1474_v24, 0.0 }
0x151f   :  { %1477 = vadd.xlane.f32.xlu1 %v1476_v30 }
0x15a8   :  { %v1478_v34 = vpop.xlane.xlu1 %1477 }
0x15a9   :  { %v1479_v0 = vadd.f32 %v1478_v34, %v2638_v35 }
0x15ab   :  { %v2918_v25 = vadd.f32 %v2915_v37, %v1479_v0 }
0x15ad   :  { %1483 = vperm.xlu0 %2259, %v2918_v25  }
0x15b1   :  { %2260 = vset.pattern.permute.xlu0 %v2516_v33 }
0x15b2   :  { %155 = vperm.xlu0 %2260, %v2915_v37  }
0x15d5   :  { %v1776_v2 = vpop.f32.mrf.mxu0 }
0x15d7   :  { %v2218_v26 = vpop.f32.mrf.mxu0 }
0x15d8   :  { %v2393_v26 = vld [vmem:[#allocation6 + $0x1] ss:$0 sm:$0xff] }
0x15da   :  { %v1659_v39 = vpop.f32.mrf.mxu1 }
0x15dc   :  { %v2211_v3 = vpop.f32.mrf.mxu1 }
0x15dd   :  { %v2394_v3 = vld [vmem:[%s2991_s3 + $0x1] ss:$0 sm:$0xff]  ;;  %s2028_s3 = sld [smem:[#allocation9 + $0x1]] }
0x1628   :  { %v1484_v40 = vpop.permute.xlu0 %1483 }
0x1629   :  { %v1486_v41 = vmul.f32 %v2646_v43, %v1484_v40 }
0x162b   :  { %v1487_v42 = vadd.f32 %v2651_v45, %v1486_v41 }
0x162d   :  { %v1780_v44 = vadd.f32 %v1776_v2, %v1487_v42  ;;  %v156_v46 = vpop.permute.xlu0 %155 }
0x162e   :  { %v158_v48 = vmul.f32 %v2391_v47, %v156_v46 }
0x162f   :  { %2366 = vtanh.f32 %v1780_v44  ;;  %v2062_v43 = vmul.f32 -1.442695, %v1780_v44 }
0x1630   :  { %v159_v50 = vadd.f32 %v2392_v49, %v158_v48  ;;  %v2065_v49 = vld [vmem:[%s2992_s4 + $0x1] ss:$0 sm:$0xff]  ;;  %s2517_s4 = smov [#allocation10]  }
0x1632   :  { %v1663_v51 = vadd.f32 %v1659_v39, %v159_v50 }
0x1634   :  { %2368 = vtanh.f32 %v1663_v51  ;;  %v2060_v45 = vmul.f32 -1.442695, %v1663_v51 }
0x1635   :  { %2370 = vpow2.f32 %v2062_v43 }
0x1636   :  { %2372 = vpow2.f32 %v2060_v45 }
0x163c   :  { %v2367_v1 = vpop.eup %2366 }
0x163d   :  { %1790 = vrot.lane.b32.xlu0 %v2367_v1, %s2506_s19 }
0x1641   :  { %v2369_v52 = vpop.eup %2368 }
0x1642   :  { %1673 = vrot.lane.b32.xlu0 %v2369_v52, %s2506_s19  ;;  %v2371_v53 = vpop.eup %2370 }
0x1643   :  { %v1784_v54 = vadd.f32 1.0, %v2371_v53  ;;  %v2373_v55 = vpop.eup %2372 }
0x1644   :  { %v1667_v56 = vadd.f32 1.0, %v2373_v55 }
0x1645   :  { %2374 = vrcp.f32 %v1784_v54 }
0x1646   :  { %2376 = vrcp.f32 %v1667_v56 }
0x1652   :  { %v2375_v6 = vpop.eup %2374 }
0x1653   :  { %v2377_v58 = vpop.eup %2376  ;;  %v1788_v61 = vmul.f32 %v2375_v6, %v2890_v12 }
0x1654   :  { %v1671_v16 = vmul.f32 %v2377_v58, %v2894_v14 }
0x16af   :  { %v1791_v57 = vpop.permute.xlu0 %1790 }
0x16b0   :  { %v1793_v8 = vmul.f32 %v2375_v6, %v1791_v57 }
0x16b2   :  { %1795 = vrot.lane.b32.xlu0 %v1793_v8, %s2496_s24 }
0x16b4   :  { %v1674_v59 = vpop.permute.xlu0 %1673 }
0x16b5   :  { %v1676_v60 = vmul.f32 %v2377_v58, %v1674_v59 }
0x16b7   :  { %1678 = vrot.lane.b32.xlu0 %v1676_v60, %s2496_s24 }
0x1724   :  { %v1796_v62 = vpop.permute.xlu0 %1795 }
0x1725   :  { %v1798_v7 = vadd.f32 %v1796_v62, %v1788_v61 }
0x1727   :  { %2378 = vtanh.f32 %v1798_v7 }
0x1729   :  { %v1679_v17 = vpop.permute.xlu0 %1678 }
0x172a   :  { %v1681_v9 = vadd.f32 %v1679_v17, %v1671_v16 }
0x172c   :  { %2380 = vtanh.f32 %v1681_v9 }
0x1734   :  { %v2379_v19 = vpop.eup %2378 }
0x1735   :  { %1801 = vrot.lane.b32.xlu0 %v2379_v19, %s2508_s23 }
0x1739   :  { %v2381_v20 = vpop.eup %2380 }
0x173a   :  { %1684 = vrot.lane.b32.xlu0 %v2381_v20, %s2508_s23 }
0x17a7   :  { %v1802_v21 = vpop.permute.xlu0 %1801 }
0x17a8   :  { %v1804_v13 = vmul.f32 %v2375_v6, %v1802_v21 }
0x17aa   :  { %1806 = vrot.lane.b32.xlu1 %v1804_v13, %s2509_s25 }
0x17ac   :  { %v1685_v10 = vpop.permute.xlu0 %1684 }
0x17ad   :  { %v1687_v12 = vmul.f32 %v2377_v58, %v1685_v10 }
0x17af   :  { %v1688_v22 = vmul.f32 %v1687_v12, %v2623_v28 }
0x17b1   :  { %1690 = vrot.lane.b32.xlu0 %v1688_v22, %s2509_s25 }
0x181c   :  { %v1807_v14 = vpop.permute.xlu1 %1806 }
0x181d   :  { %2224 = vmatmul.mubr.msk.f32.vlgmr.msra.gmra.mxu1 %vm160_vm1, %v1807_v14 }
0x1823   :  { %v1691_v23 = vpop.permute.xlu0 %1690 }
0x1824   :  { %v1693_v24 = vsel %vm160_vm1, %v1691_v23, 0.0 }
0x1825   :  { %1694 = vadd.xlane.f32.xlu0 %v1693_v24 }
0x18ae   :  { %v1695_v30 = vpop.xlane.xlu0 %1694 }
0x18af   :  { %v1696_v33 = vadd.f32 %v1695_v30, %v2638_v35 }
0x18b1   :  { %v2942_v34 = vadd.f32 %v2915_v37, %v1696_v33 }
0x18b3   :  { %1700 = vperm.xlu1 %2261, %v2942_v34  }
0x18dd   :  { %v1876_v0 = vpop.f32.mrf.mxu1 }
0x18df   :  { %v2225_v2 = vpop.f32.mrf.mxu1 }
0x192e   :  { %v1701_v28 = vpop.permute.xlu1 %1700 }
0x192f   :  { %v1703_v39 = vmul.f32 %v2393_v26, %v1701_v28 }
0x1931   :  { %v1704_v40 = vadd.f32 %v2394_v3, %v1703_v39 }
0x1933   :  { %v1880_v41 = vadd.f32 %v1876_v0, %v1704_v40 }
0x1935   :  { %2382 = vtanh.f32 %v1880_v41  ;;  %v2064_v35 = vmul.f32 -1.442695, %v1880_v41 }
0x1937   :  { %2384 = vpow2.f32 %v2064_v35 }
0x1942   :  { %v2383_v42 = vpop.eup %2382 }
0x1943   :  { %1890 = vrot.lane.b32.xlu1 %v2383_v42, %s2506_s19 }
0x1944   :  { %v2385_v37 = vpop.eup %2384 }
0x1945   :  { %v1884_v44 = vadd.f32 1.0, %v2385_v37 }
0x1947   :  { %2386 = vrcp.f32 %v1884_v44 }
0x1954   :  { %v2387_v46 = vpop.eup %2386 }
0x1955   :  { %v1888_v50 = vmul.f32 %v2387_v46, %v1798_v7 }
0x19b5   :  { %v1891_v47 = vpop.permute.xlu1 %1890 }
0x19b6   :  { %v1893_v48 = vmul.f32 %v2387_v46, %v1891_v47 }
0x19b8   :  { %1895 = vrot.lane.b32.xlu1 %v1893_v48, %s2496_s24  ;;  %s2016_s24 = sshll.u32 %s2517_s4, 4  ;;  %s2017_s24 = int_to_ptr.vmem [resolvable:$true] %s2016_s24 }
0x19b9   :  { %s2467_s11 = scalar_lea.vmem %s2017_s24, 128  ;;  %p2472_p7 = scmp.lt.s32.totalorder %s2017_s24, %s2017_s24 }
0x19ba   :  { %p2468_p6 = scmp.ne.s32.totalorder %s2017_s24, %s2467_s11  ;;  %p2473_p8 = scmp.lt.s32.totalorder %s2467_s11, %s2467_s11 }
0x19bc   :  { %1910 = vrot.lane.b32.xlu1 %v2065_v49, %s2507_s22  ;;  %p2474_p9 = por %p2473_p8, %p2472_p7 }
0x19be   :  { %p2475_p10 = pnand %p2474_p9, %p2468_p6 }
0x1a2a   :  { %v1896_v51 = vpop.permute.xlu1 %1895 }
0x1a2b   :  { %v1898_v1 = vadd.f32 %v1896_v51, %v1888_v50 }
0x1a2d   :  { %2388 = vtanh.f32 %v1898_v1 }
0x1a2e   :  { %v1911_v52 = vpop.permute.xlu1 %1910 }
0x1a2f   :  { %v1913_v43 = vmul.f32 %v1911_v52, %v2670_v18  ;;  %v1924_v45 = vmul.f32 %v1911_v52, %v2716_v11  ;;  %v1934_v57 = vmul.f32 %v1911_v52, %v2762_v5  ;;  %v1944_v18 = vmul.f32 %v1911_v52, %v2808_v63 }
0x1a30   :  { %v1954_v11 = vmul.f32 %v1911_v52, %v2854_v4  ;;  %v1964_v8 = vmul.f32 %v1911_v52, %v2899_v15  ;;  %v1974_v58 = vmul.f32 %v1911_v52, %v1804_v13  ;;  %v1921_v5 = vstv %s2028_s3 }
0x1a31   :  { %1915 = vrot.lane.b32.xlu0 %v1913_v43, %s2509_s25 }
0x1a35   :  { %1926 = vrot.lane.b32.xlu0 %v1924_v45, %s2509_s25 }
0x1a3a   :  { %v2389_v53 = vpop.eup %2388 }
0x1a3b   :  { %1901 = vrot.lane.b32.xlu1 %v2389_v53, %s2508_s23 }
0x1aa3   :  { %v1916_v54 = vpop.permute.xlu0 %1915 }
0x1aa4   :  { %v1918_v55 = vsel %vm160_vm1, %v1916_v54, 0.0 }
0x1aa5   :  { %1919 = vadd.xlane.f32.xlu1 %v1918_v55 }
0x1aa7   :  { %v1927_v56 = vpop.permute.xlu0 %1926 }
0x1aa8   :  { %v1929_v6 = vsel %vm160_vm1, %v1927_v56, 0.0 }
0x1aa9   :  { %1930 = vadd.xlane.f32.xlu0 %v1929_v6 }
0x1aad   :  { %v1902_v59 = vpop.permute.xlu1 %1901 }
0x1aae   :  { %v1904_v13 = vmul.f32 %v2387_v46, %v1902_v59 }
0x1ab0   :  { %v1984_v22 = vmul.f32 %v1911_v52, %v1904_v13 }
0x1ab6   :  { %1936 = vrot.lane.b32.xlu1 %v1934_v57, %s2509_s25 }
0x1abf   :  { %1946 = vrot.lane.b32.xlu0 %v1944_v18, %s2509_s25 }
0x1ac3   :  { %1956 = vrot.lane.b32.xlu0 %v1954_v11, %s2509_s25 }
0x1ac7   :  { %1966 = vrot.lane.b32.xlu0 %v1964_v8, %s2509_s25 }
0x1acb   :  { %1976 = vrot.lane.b32.xlu0 %v1974_v58, %s2509_s25 }
0x1b2e   :  { %v1920_v60 = vpop.xlane.xlu1 %1919 }
0x1b2f   :  { %v1922_v61 = vadd.f32 %v1921_v5, %v1920_v60 }
0x1b31   :  { %v1923_v4 = vadd.f32 %v1922_v61, %v2642_v38 }
0x1b32   :  { %v1931_v62 = vpop.xlane.xlu0 %1930  ;;  %v1937_v63 = vpop.permute.xlu1 %1936 }
0x1b33   :  { %v1932_v7 = vadd.f32 %v1931_v62, %v1921_v5  ;;  %v1939_v16 = vsel %vm160_vm1, %v1937_v63, 0.0 }
0x1b34   :  { %1940 = vadd.xlane.f32.xlu1 %v1939_v16 }
0x1b35   :  { %v1933_v15 = vadd.f32 %v1932_v7, %v2694_v32 }
0x1b36   :  { %v1947_v17 = vpop.permute.xlu0 %1946 }
0x1b37   :  { %v1995_v9 = vsel %vm1994_vm2, %v1923_v4, %v1933_v15  ;;  %v1949_v19 = vsel %vm160_vm1, %v1947_v17, 0.0 }
0x1b38   :  { %1950 = vadd.xlane.f32.xlu0 %v1949_v19 }
0x1b3a   :  { %v1957_v20 = vpop.permute.xlu0 %1956 }
0x1b3b   :  { %v1959_v38 = vsel %vm160_vm1, %v1957_v20, 0.0 }
0x1b3e   :  { %v1967_v21 = vpop.permute.xlu0 %1966 }
0x1b3f   :  { %v1969_v10 = vsel %vm160_vm1, %v1967_v21, 0.0 }
0x1b40   :  { %1970 = vadd.xlane.f32.xlu0 %v1969_v10 }
0x1b42   :  { %v1977_v12 = vpop.permute.xlu0 %1976 }
0x1b43   :  { %v1979_v14 = vsel %vm160_vm1, %v1977_v12, 0.0 }
0x1b44   :  { %1980 = vadd.xlane.f32.xlu0 %v1979_v14 }
0x1b45   :  { %1986 = vrot.lane.b32.xlu1 %v1984_v22, %s2509_s25 }
0x1b69   :  { %1960 = vadd.xlane.f32.xlu1 %v1959_v38 }
0x1bbd   :  { %v1941_v32 = vpop.xlane.xlu1 %1940 }
0x1bbe   :  { %v1942_v23 = vadd.f32 %v1941_v32, %v1921_v5 }
0x1bc0   :  { %v1943_v24 = vadd.f32 %v1942_v23, %v2740_v27 }
0x1bc1   :  { %v1987_v30 = vpop.permute.xlu1 %1986  ;;  %v1951_v2 = vpop.xlane.xlu0 %1950 }
0x1bc2   :  { %v1997_v33 = vsel %vm1996_vm3, %v1995_v9, %v1943_v24  ;;  %v1989_v0 = vsel %vm160_vm1, %v1987_v30, 0.0  ;;  %v1952_v26 = vadd.f32 %v1951_v2, %v1921_v5 }
0x1bc3   :  { %1990 = vadd.xlane.f32.xlu0 %v1989_v0 }
0x1bc4   :  { %v1953_v40 = vadd.f32 %v1952_v26, %v2786_v29 }
0x1bc6   :  { %v1999_v37 = vsel %vm1998_vm4, %v1997_v33, %v1953_v40 }
0x1bc9   :  { %v1971_v39 = vpop.xlane.xlu0 %1970 }
0x1bca   :  { %v1972_v42 = vadd.f32 %v1971_v39, %v1921_v5 }
0x1bcc   :  { %v1973_v46 = vadd.f32 %v1972_v42, %v2877_v36 }
0x1bcd   :  { %v1981_v35 = vpop.xlane.xlu0 %1980 }
0x1bce   :  { %v1982_v27 = vadd.f32 %v1981_v35, %v1921_v5 }
0x1bd0   :  { %v1983_v29 = vadd.f32 %v1982_v27, %v2918_v25 }
0x1bf2   :  { %v1961_v28 = vpop.xlane.xlu1 %1960 }
0x1bf3   :  { %v1962_v3 = vadd.f32 %v1961_v28, %v1921_v5 }
0x1bf5   :  { %v1963_v41 = vadd.f32 %v1962_v3, %v2832_v31 }
0x1bf7   :  { %v2001_v44 = vsel %vm2000_vm5, %v1999_v37, %v1963_v41 }
0x1bf8   :  { %v2003_v49 = vsel %vm2002_vm6, %v2001_v44, %v1973_v46 }
0x1bf9   :  { %v2005_v50 = vsel %vm2004_vm7, %v2003_v49, %v1983_v29 }
0x1c4c   :  { %v1991_v47 = vpop.xlane.xlu0 %1990 }
0x1c4d   :  { %v1992_v48 = vadd.f32 %v1991_v47, %v1921_v5 }
0x1c4f   :  { %v1993_v31 = vadd.f32 %v1992_v48, %v2942_v34 }
0x1c51   :  { %v2007_v51 = vsel %vm2006_vm8, %v2005_v50, %v1993_v31 }
0x1c52   :  { %2009 = vst.msk [vmem:[#allocation10] sm:$0xff] %vm2008_vm9, %v2007_v51 }
0x1c53   :  { %2478 = shalt.err (!%p2475_p10)
}
0x1c54   :  { %2019 = dma.vmem_to_hbm [thread:$0]  %s2017_s24, 128, %s2994_s6, [#allocation4]  }
0x1c55   :  { %2493 = dma.done.wait [#allocation4], 128  }
0x1c56   :  { %2494 = vsyncadd [#allocation4], 4294967168 }
0x1c57   :  { %2023 = vsyncpa [#allocation3], 1 }
0x1c58   :  { %2024 = vsyncpa [#allocation7], 1 }
0x1c59   :  { %2025 = vsyncpa [#allocation4], 1 }
0x1c5a   :  { %2026 = vsyncpa [#allocation5], 1 }

</bundles_post_ra>
